<compile_context>
chip_gen: v7x
topology: tpu7x:2x2x1
jax: 0.10.0
libtpu: 0.0.40
codegen_flags: <defaults>
</compile_context>

<pallas_src>
import functools

import jax
import jax.numpy as jnp
from jax import lax
from jax.experimental import pallas as pl
from jax.experimental.pallas import tpu as pltpu


# ----------------------------------------------------------------------------
# Fused bidirectional LSTM kernel
# ----------------------------------------------------------------------------
def _bilstm_kernel(x_ref, w_ih_ref, w_hh_ref, b_ref,
                   out_f_ref, out_b_ref, xw_ref, *, T, B, H):
    """Fused fwd+bwd LSTM over a whole sequence.

    x_ref    : (T*B, I)   time-major input, flattened over (T, B)
    w_ih_ref : (I, 8H)    [fwd gates i,f,g,o | bwd gates i,f,g,o]
    w_hh_ref : (2H, 8H)   block-diagonal [[W_hh_f, 0], [0, W_hh_b]]
    b_ref    : (1, 8H)    combined bias (b_ih + b_hh), both directions
    out_f_ref: (T, B, H)  forward hidden at every step
    out_b_ref: (T, B, H)  backward hidden at every step (torch layout)
    xw_ref   : (T*B, 8H)  VMEM scratch: hoisted input projection
    """
    H4 = 4 * H
    H8 = 8 * H

    # (1) Hoisted, lane-dense input projection for BOTH directions,
    #     bias folded in: one (T*B, I) @ (I, 8H) matmul, off the serial path.
    xw_ref[...] = (
        jnp.dot(x_ref[...], w_ih_ref[...], preferred_element_type=jnp.float32)
        + b_ref[...])

    w_hh = w_hh_ref[...]                                   # (2H, 8H), resident

    def act(g):
        # PyTorch gate order (i, f, g, o) within each 4H block.
        i = jax.nn.sigmoid(g[:, 0:H])
        f = jax.nn.sigmoid(g[:, H:2 * H])
        gg = jnp.tanh(g[:, 2 * H:3 * H])
        o = jax.nn.sigmoid(g[:, 3 * H:4 * H])
        return i, f, gg, o

    def step(t, carry):
        h, c = carry                                       # (B, 2H) each
        # Single (B, 2H) @ (2H, 8H) MXU pass covers both directions' gates.
        gh = jnp.dot(h, w_hh, preferred_element_type=jnp.float32)   # (B, 8H)

        xw_f = xw_ref[pl.ds(t * B, B), :]                  # rows of time t
        xw_b = xw_ref[pl.ds((T - 1 - t) * B, B), :]        # rows of time T-1-t
        g_f = xw_f[:, 0:H4] + gh[:, 0:H4]
        g_b = xw_b[:, H4:H8] + gh[:, H4:H8]

        i_f, f_f, gg_f, o_f = act(g_f)
        i_b, f_b, gg_b, o_b = act(g_b)

        c_f = f_f * c[:, 0:H] + i_f * gg_f
        c_b = f_b * c[:, H:2 * H] + i_b * gg_b
        h_f = o_f * jnp.tanh(c_f)
        h_b = o_b * jnp.tanh(c_b)

        out_f_ref[t] = h_f
        out_b_ref[T - 1 - t] = h_b                         # torch bwd layout

        return (jnp.concatenate([h_f, h_b], axis=1),
                jnp.concatenate([c_f, c_b], axis=1))

    zeros = jnp.zeros((B, 2 * H), jnp.float32)
    lax.fori_loop(0, T, step, (zeros, zeros))


def bilstm(x_tbi, p):
    """Fused bidirectional LSTM.  x_tbi: (T, B, I) -> (T, B, 2H)."""
    T, B, I = x_tbi.shape
    w_ih, w_hh, b = p["w_ih"], p["w_hh"], p["b"]
    H = w_hh.shape[0] // 2
    x2 = x_tbi.reshape(T * B, I)

    vmem = pl.BlockSpec(memory_space=pltpu.MemorySpace.VMEM)
    kernel = functools.partial(_bilstm_kernel, T=T, B=B, H=H)
    out_f, out_b = pl.pallas_call(
        kernel,
        out_shape=(jax.ShapeDtypeStruct((T, B, H), jnp.float32),
                   jax.ShapeDtypeStruct((T, B, H), jnp.float32)),
        in_specs=[vmem, vmem, vmem, vmem],
        out_specs=(vmem, vmem),
        scratch_shapes=[pltpu.VMEM((T * B, 8 * H), jnp.float32)],
    )(x2, w_ih, w_hh, b)
    return jnp.concatenate([out_f, out_b], axis=-1)


# ----------------------------------------------------------------------------
# Cross-attention batched matmul  Q @ C^T  (single invocation, no grid)
# ----------------------------------------------------------------------------
def _bmm_nt_kernel(a_ref, b_ref, o_ref):
    # Whole batch in one call; batched, rhs-transposed contraction on the MXU.
    o_ref[...] = jnp.einsum("bqd,bcd->bqc", a_ref[...], b_ref[...],
                            preferred_element_type=jnp.float32)


def batched_bmm_nt(a_bqd, b_bcd):
    B, Q, D = a_bqd.shape
    _, C, _ = b_bcd.shape
    vmem = pl.BlockSpec(memory_space=pltpu.MemorySpace.VMEM)
    return pl.pallas_call(
        _bmm_nt_kernel,
        out_shape=jax.ShapeDtypeStruct((B, Q, C), jnp.float32),
        in_specs=[vmem, vmem],
        out_specs=vmem,
    )(a_bqd, b_bcd)


# ----------------------------------------------------------------------------
# Parameter construction (deterministic, synthetic) — fused layouts
# ----------------------------------------------------------------------------
def _init_bilstm(key, in_dim, hidden):
    kf, kb = jax.random.split(key)

    def one_dir(k):
        k1, k2, k3 = jax.random.split(k, 3)
        w_ih = jax.random.uniform(k1, (in_dim, 4 * hidden), jnp.float32, -0.1, 0.1)
        w_hh = jax.random.uniform(k2, (hidden, 4 * hidden), jnp.float32, -0.1, 0.1)
        b = jax.random.uniform(k3, (1, 4 * hidden), jnp.float32, -0.1, 0.1)
        return w_ih, w_hh, b

    wi_f, wh_f, b_f = one_dir(kf)
    wi_b, wh_b, b_b = one_dir(kb)

    w_ih = jnp.concatenate([wi_f, wi_b], axis=1)                     # (I, 8H)
    b = jnp.concatenate([b_f, b_b], axis=1)                          # (1, 8H)
    zeros = jnp.zeros((hidden, 4 * hidden), jnp.float32)
    w_hh = jnp.concatenate(
        [jnp.concatenate([wh_f, zeros], axis=1),
         jnp.concatenate([zeros, wh_b], axis=1)], axis=0)            # (2H, 8H)
    return {"w_ih": w_ih, "w_hh": w_hh, "b": b}


def init_encoder_params(key, vocab, feature_dim, n_lstm_cells,
                        max_columns_per_table, max_words_per_question):
    ke, k1, k2, k3 = jax.random.split(key, 4)
    embedding = jax.random.normal(ke, (vocab, feature_dim), jnp.float32)
    H2 = 2 * n_lstm_cells
    return {
        "embedding": embedding,
        # question_encoder = column_encoder (shared weights in the torch model)
        "enc": _init_bilstm(k1, feature_dim, n_lstm_cells),
        "att_q": _init_bilstm(k2, H2 + max_columns_per_table, n_lstm_cells),
        "att_c": _init_bilstm(k3, H2 + max_words_per_question, n_lstm_cells),
    }


# ----------------------------------------------------------------------------
# Encoder forward pass
# ----------------------------------------------------------------------------
@jax.jit
def encoder_forward(params, questions, columns):
    """questions: (B, Q) int32 ids, columns: (B, C, W) int32 ids.

    Returns (questions_output (B,Q,2H), columns_output (B,C,2H),
             questions_encoded (B,2H)) — same semantics as Encoder.forward.
    """
    emb = params["embedding"]
    q_emb = jnp.take(emb, questions, axis=0)          # (B, Q, E)   (dropout = id)
    c_emb = jnp.take(emb, columns, axis=0)            # (B, C, W, E)

    # --- question encoder ---------------------------------------------------
    q_tbi = jnp.transpose(q_emb, (1, 0, 2))           # (Q, B, E)
    q_out = bilstm(q_tbi, params["enc"])              # (Q, B, 2H)
    questions_output = jnp.transpose(q_out, (1, 0, 2))    # (B, Q, 2H)

    # --- column encoder (encode_columns, shared weights) ---------------------
    B, C, W, E = c_emb.shape
    cols = jnp.transpose(c_emb.reshape(B * C, W, E), (1, 0, 2))   # (W, B*C, E)
    c_out = bilstm(cols, params["enc"])               # (W, B*C, 2H)
    encoded_columns = c_out[-1].reshape(B, C, -1)     # (B, C, 2H)  (= output[-1])

    # --- cross attention (single Pallas batched matmul) ----------------------
    cross = batched_bmm_nt(questions_output, encoded_columns)     # (B, Q, C)
    cross_c = jnp.transpose(cross, (0, 2, 1))                      # (B, C, Q)

    q_cat = jnp.concatenate([questions_output, cross], axis=2)     # (B,Q,2H+C)
    c_cat = jnp.concatenate([encoded_columns, cross_c], axis=2)    # (B,C,2H+Q)

    # --- attended encoders ----------------------------------------------------
    q2_out = bilstm(jnp.transpose(q_cat, (1, 0, 2)), params["att_q"])  # (Q,B,2H)
    c2_out = bilstm(jnp.transpose(c_cat, (1, 0, 2)), params["att_c"])  # (C,B,2H)

    questions_encoded = q2_out[-1]                    # (B, 2H)
    return (jnp.transpose(q2_out, (1, 0, 2)),
            jnp.transpose(c2_out, (1, 0, 2)),
            questions_encoded)


# ----------------------------------------------------------------------------
# Main
# ----------------------------------------------------------------------------
if __name__ == "__main__":
    VOCAB = 20
    FEATURE_DIM = 16            # embedding dim E
    N_LSTM_CELLS = 16           # H  (8H = 128 -> lane-dense fused gates)
    BATCH = 2
    MAX_WORDS_PER_QUESTION = 8  # Q
    MAX_COLUMNS_PER_TABLE = 4   # C
    WORDS_PER_COLUMN = 3        # W

    key = jax.random.PRNGKey(0)
    kp, kq, kc = jax.random.split(key, 3)

    params = init_encoder_params(
        kp, VOCAB, FEATURE_DIM, N_LSTM_CELLS,
        MAX_COLUMNS_PER_TABLE, MAX_WORDS_PER_QUESTION)

    questions = jax.random.randint(
        kq, (BATCH, MAX_WORDS_PER_QUESTION), 0, VOCAB, dtype=jnp.int32)
    columns = jax.random.randint(
        kc, (BATCH, MAX_COLUMNS_PER_TABLE, WORDS_PER_COLUMN), 0, VOCAB,
        dtype=jnp.int32)

    q_out, c_out, q_enc = encoder_forward(params, questions, columns)
    jax.block_until_ready((q_out, c_out, q_enc))

    assert q_out.shape == (BATCH, MAX_WORDS_PER_QUESTION, 2 * N_LSTM_CELLS)
    assert c_out.shape == (BATCH, MAX_COLUMNS_PER_TABLE, 2 * N_LSTM_CELLS)
    assert q_enc.shape == (BATCH, 2 * N_LSTM_CELLS)

    print("KERNEL_OK")
</pallas_src>

<mosaic_0001>
module attributes {stable_mosaic.version = 11 : i64} {
  func.func @_bilstm_kernel(%arg0: memref<24x16xf32, #tpu.memory_space<vmem>>, %arg1: memref<16x128xf32, #tpu.memory_space<vmem>>, %arg2: memref<32x128xf32, #tpu.memory_space<vmem>>, %arg3: memref<1x128xf32, #tpu.memory_space<vmem>>, %arg4: memref<3x8x16xf32, #tpu.memory_space<vmem>>, %arg5: memref<3x8x16xf32, #tpu.memory_space<vmem>>, %arg6: memref<24x128xf32, #tpu.memory_space<vmem>>) attributes {dimension_semantics = [], scalar_prefetch = 0 : i64, scratch_operands = 1 : i64, tpu.core_type = #tpu.core_type<tc>} {
    %c0 = arith.constant 0 : index
    %c0_0 = arith.constant 0 : index
    %0 = vector.load %arg0[%c0, %c0_0] : memref<24x16xf32, #tpu.memory_space<vmem>>, vector<24x16xf32>
    %c0_1 = arith.constant 0 : index
    %c0_2 = arith.constant 0 : index
    %1 = vector.load %arg1[%c0_1, %c0_2] : memref<16x128xf32, #tpu.memory_space<vmem>>, vector<16x128xf32>
    %cst = arith.constant dense<0.000000e+00> : vector<24x128xf32>
    %2 = tpu.matmul %0, %1, %cst {dimension_numbers = #tpu.dot_dimension_numbers<[1], [0], [0], [1], [0, 0, 1, 1], [], []>} : vector<24x16xf32>, vector<16x128xf32>, vector<24x128xf32> -> vector<24x128xf32>
    %c0_3 = arith.constant 0 : index
    %c0_4 = arith.constant 0 : index
    %3 = vector.load %arg3[%c0_3, %c0_4] : memref<1x128xf32, #tpu.memory_space<vmem>>, vector<1x128xf32>
    %4 = vector.broadcast %3 : vector<1x128xf32> to vector<24x128xf32>
    %5 = arith.addf %2, %4 : vector<24x128xf32>
    %c0_5 = arith.constant 0 : index
    %c0_6 = arith.constant 0 : index
    %6 = vector.load %arg6[%c0_5, %c0_6] : memref<24x128xf32, #tpu.memory_space<vmem>>, vector<24x128xf32>
    tpu.vector_store %arg6[%c0_5, %c0_6], %5 {strides = array<i32>} : memref<24x128xf32, #tpu.memory_space<vmem>>, vector<24x128xf32>,
    %c0_7 = arith.constant 0 : index
    %c0_8 = arith.constant 0 : index
    %7 = vector.load %arg2[%c0_7, %c0_8] : memref<32x128xf32, #tpu.memory_space<vmem>>, vector<32x128xf32>
    %cst_9 = arith.constant 0.000000e+00 : f32
    %8 = vector.broadcast %cst_9 : f32 to vector<8x32xf32>
    %c0_i32 = arith.constant 0 : i32
    %c3_i32 = arith.constant 3 : i32
    %9 = arith.addi %c0_i32, %c3_i32 : i32
    %c1_i32 = arith.constant 1 : i32
    %10:2 = scf.for %arg7 = %c0_i32 to %9 step %c1_i32 iter_args(%arg8 = %8, %arg9 = %8) -> (vector<8x32xf32>, vector<8x32xf32>)  : i32 {
      %cst_11 = arith.constant dense<0.000000e+00> : vector<8x128xf32>
      %11 = tpu.matmul %arg8, %7, %cst_11 {dimension_numbers = #tpu.dot_dimension_numbers<[1], [0], [0], [1], [0, 0, 1, 1], [], []>} : vector<8x32xf32>, vector<32x128xf32>, vector<8x128xf32> -> vector<8x128xf32>
      %c8_i32 = arith.constant 8 : i32
      %12 = arith.muli %arg7, %c8_i32 : i32
      %13 = arith.index_cast %12 : i32 to index
      %c0_12 = arith.constant 0 : index
      %14 = vector.load %arg6[%13, %c0_12] : memref<24x128xf32, #tpu.memory_space<vmem>>, vector<8x128xf32>
      %c2_i32 = arith.constant 2 : i32
      %15 = arith.subi %c2_i32, %arg7 : i32
      %c8_i32_13 = arith.constant 8 : i32
      %16 = arith.muli %15, %c8_i32_13 : i32
      %17 = arith.index_cast %16 : i32 to index
      %c0_14 = arith.constant 0 : index
      %18 = vector.load %arg6[%17, %c0_14] : memref<24x128xf32, #tpu.memory_space<vmem>>, vector<8x128xf32>
      %19 = vector.extract_strided_slice %14 {offsets = [0, 0], sizes = [8, 64], strides = [1, 1]} : vector<8x128xf32> to vector<8x64xf32>
      %20 = vector.extract_strided_slice %11 {offsets = [0, 0], sizes = [8, 64], strides = [1, 1]} : vector<8x128xf32> to vector<8x64xf32>
      %21 = arith.addf %19, %20 : vector<8x64xf32>
      %22 = vector.extract_strided_slice %18 {offsets = [0, 64], sizes = [8, 64], strides = [1, 1]} : vector<8x128xf32> to vector<8x64xf32>
      %23 = vector.extract_strided_slice %11 {offsets = [0, 64], sizes = [8, 64], strides = [1, 1]} : vector<8x128xf32> to vector<8x64xf32>
      %24 = arith.addf %22, %23 : vector<8x64xf32>
      %25 = vector.extract_strided_slice %21 {offsets = [0, 0], sizes = [8, 16], strides = [1, 1]} : vector<8x64xf32> to vector<8x16xf32>
      %26 = arith.negf %25 : vector<8x16xf32>
      %27 = math.exp %26 : vector<8x16xf32>
      %cst_15 = arith.constant 1.000000e+00 : f32
      %28 = vector.broadcast %cst_15 : f32 to vector<8x16xf32>
      %29 = arith.addf %28, %27 : vector<8x16xf32>
      %30 = arith.divf %28, %29 : vector<8x16xf32>
      %31 = vector.extract_strided_slice %21 {offsets = [0, 16], sizes = [8, 16], strides = [1, 1]} : vector<8x64xf32> to vector<8x16xf32>
      %32 = arith.negf %31 : vector<8x16xf32>
      %33 = math.exp %32 : vector<8x16xf32>
      %cst_16 = arith.constant 1.000000e+00 : f32
      %34 = vector.broadcast %cst_16 : f32 to vector<8x16xf32>
      %35 = arith.addf %34, %33 : vector<8x16xf32>
      %36 = arith.divf %34, %35 : vector<8x16xf32>
      %37 = vector.extract_strided_slice %21 {offsets = [0, 32], sizes = [8, 16], strides = [1, 1]} : vector<8x64xf32> to vector<8x16xf32>
      %38 = math.tanh %37 : vector<8x16xf32>
      %39 = vector.extract_strided_slice %21 {offsets = [0, 48], sizes = [8, 16], strides = [1, 1]} : vector<8x64xf32> to vector<8x16xf32>
      %40 = arith.negf %39 : vector<8x16xf32>
      %41 = math.exp %40 : vector<8x16xf32>
      %cst_17 = arith.constant 1.000000e+00 : f32
      %42 = vector.broadcast %cst_17 : f32 to vector<8x16xf32>
      %43 = arith.addf %42, %41 : vector<8x16xf32>
      %44 = arith.divf %42, %43 : vector<8x16xf32>
      %45 = vector.extract_strided_slice %24 {offsets = [0, 0], sizes = [8, 16], strides = [1, 1]} : vector<8x64xf32> to vector<8x16xf32>
      %46 = arith.negf %45 : vector<8x16xf32>
      %47 = math.exp %46 : vector<8x16xf32>
      %cst_18 = arith.constant 1.000000e+00 : f32
      %48 = vector.broadcast %cst_18 : f32 to vector<8x16xf32>
      %49 = arith.addf %48, %47 : vector<8x16xf32>
      %50 = arith.divf %48, %49 : vector<8x16xf32>
      %51 = vector.extract_strided_slice %24 {offsets = [0, 16], sizes = [8, 16], strides = [1, 1]} : vector<8x64xf32> to vector<8x16xf32>
      %52 = arith.negf %51 : vector<8x16xf32>
      %53 = math.exp %52 : vector<8x16xf32>
      %cst_19 = arith.constant 1.000000e+00 : f32
      %54 = vector.broadcast %cst_19 : f32 to vector<8x16xf32>
      %55 = arith.addf %54, %53 : vector<8x16xf32>
      %56 = arith.divf %54, %55 : vector<8x16xf32>
      %57 = vector.extract_strided_slice %24 {offsets = [0, 32], sizes = [8, 16], strides = [1, 1]} : vector<8x64xf32> to vector<8x16xf32>
      %58 = math.tanh %57 : vector<8x16xf32>
      %59 = vector.extract_strided_slice %24 {offsets = [0, 48], sizes = [8, 16], strides = [1, 1]} : vector<8x64xf32> to vector<8x16xf32>
      %60 = arith.negf %59 : vector<8x16xf32>
      %61 = math.exp %60 : vector<8x16xf32>
      %cst_20 = arith.constant 1.000000e+00 : f32
      %62 = vector.broadcast %cst_20 : f32 to vector<8x16xf32>
      %63 = arith.addf %62, %61 : vector<8x16xf32>
      %64 = arith.divf %62, %63 : vector<8x16xf32>
      %65 = vector.extract_strided_slice %arg9 {offsets = [0, 0], sizes = [8, 16], strides = [1, 1]} : vector<8x32xf32> to vector<8x16xf32>
      %66 = arith.mulf %36, %65 : vector<8x16xf32>
      %67 = arith.mulf %30, %38 : vector<8x16xf32>
      %68 = arith.addf %66, %67 : vector<8x16xf32>
      %69 = vector.extract_strided_slice %arg9 {offsets = [0, 16], sizes = [8, 16], strides = [1, 1]} : vector<8x32xf32> to vector<8x16xf32>
      %70 = arith.mulf %56, %69 : vector<8x16xf32>
      %71 = arith.mulf %50, %58 : vector<8x16xf32>
      %72 = arith.addf %70, %71 : vector<8x16xf32>
      %73 = math.tanh %68 : vector<8x16xf32>
      %74 = arith.mulf %44, %73 : vector<8x16xf32>
      %75 = math.tanh %72 : vector<8x16xf32>
      %76 = arith.mulf %64, %75 : vector<8x16xf32>
      %77 = arith.index_cast %arg7 : i32 to index
      %c0_21 = arith.constant 0 : index
      %c0_22 = arith.constant 0 : index
      %78 = vector.load %arg4[%77, %c0_21, %c0_22] : memref<3x8x16xf32, #tpu.memory_space<vmem>>, vector<1x8x16xf32>
      %79 = vector.shape_cast %78 : vector<1x8x16xf32> to vector<8x16xf32>
      %80 = vector.shape_cast %74 : vector<8x16xf32> to vector<1x8x16xf32>
      tpu.vector_store %arg4[%77, %c0_21, %c0_22], %80 {strides = array<i32>} : memref<3x8x16xf32, #tpu.memory_space<vmem>>, vector<1x8x16xf32>,
      %c2_i32_23 = arith.constant 2 : i32
      %81 = arith.subi %c2_i32_23, %arg7 : i32
      %82 = arith.index_cast %81 : i32 to index
      %c0_24 = arith.constant 0 : index
      %c0_25 = arith.constant 0 : index
      %83 = vector.load %arg5[%82, %c0_24, %c0_25] : memref<3x8x16xf32, #tpu.memory_space<vmem>>, vector<1x8x16xf32>
      %84 = vector.shape_cast %83 : vector<1x8x16xf32> to vector<8x16xf32>
      %85 = vector.shape_cast %76 : vector<8x16xf32> to vector<1x8x16xf32>
      tpu.vector_store %arg5[%82, %c0_24, %c0_25], %85 {strides = array<i32>} : memref<3x8x16xf32, #tpu.memory_space<vmem>>, vector<1x8x16xf32>,
      %86 = tpu.concatenate %74, %76 in 1 : vector<8x16xf32>, vector<8x16xf32> -> vector<8x32xf32>
      %87 = tpu.concatenate %68, %72 in 1 : vector<8x16xf32>, vector<8x16xf32> -> vector<8x32xf32>
      scf.yield %86, %87 : vector<8x32xf32>, vector<8x32xf32>
    }
    %c3_i32_10 = arith.constant 3 : i32
    return
  }
}

module attributes {stable_mosaic.version = 11 : i64} {
  func.func @_bilstm_kernel(%arg0: memref<16x16xf32, #tpu.memory_space<vmem>>, %arg1: memref<16x128xf32, #tpu.memory_space<vmem>>, %arg2: memref<32x128xf32, #tpu.memory_space<vmem>>, %arg3: memref<1x128xf32, #tpu.memory_space<vmem>>, %arg4: memref<8x2x16xf32, #tpu.memory_space<vmem>>, %arg5: memref<8x2x16xf32, #tpu.memory_space<vmem>>, %arg6: memref<16x128xf32, #tpu.memory_space<vmem>>) attributes {dimension_semantics = [], scalar_prefetch = 0 : i64, scratch_operands = 1 : i64, tpu.core_type = #tpu.core_type<tc>} {
    %c0 = arith.constant 0 : index
    %c0_0 = arith.constant 0 : index
    %0 = vector.load %arg0[%c0, %c0_0] : memref<16x16xf32, #tpu.memory_space<vmem>>, vector<16x16xf32>
    %c0_1 = arith.constant 0 : index
    %c0_2 = arith.constant 0 : index
    %1 = vector.load %arg1[%c0_1, %c0_2] : memref<16x128xf32, #tpu.memory_space<vmem>>, vector<16x128xf32>
    %cst = arith.constant dense<0.000000e+00> : vector<16x128xf32>
    %2 = tpu.matmul %0, %1, %cst {dimension_numbers = #tpu.dot_dimension_numbers<[1], [0], [0], [1], [0, 0, 1, 1], [], []>} : vector<16x16xf32>, vector<16x128xf32>, vector<16x128xf32> -> vector<16x128xf32>
    %c0_3 = arith.constant 0 : index
    %c0_4 = arith.constant 0 : index
    %3 = vector.load %arg3[%c0_3, %c0_4] : memref<1x128xf32, #tpu.memory_space<vmem>>, vector<1x128xf32>
    %4 = vector.broadcast %3 : vector<1x128xf32> to vector<16x128xf32>
    %5 = arith.addf %2, %4 : vector<16x128xf32>
    %c0_5 = arith.constant 0 : index
    %c0_6 = arith.constant 0 : index
    %6 = vector.load %arg6[%c0_5, %c0_6] : memref<16x128xf32, #tpu.memory_space<vmem>>, vector<16x128xf32>
    tpu.vector_store %arg6[%c0_5, %c0_6], %5 {strides = array<i32>} : memref<16x128xf32, #tpu.memory_space<vmem>>, vector<16x128xf32>,
    %c0_7 = arith.constant 0 : index
    %c0_8 = arith.constant 0 : index
    %7 = vector.load %arg2[%c0_7, %c0_8] : memref<32x128xf32, #tpu.memory_space<vmem>>, vector<32x128xf32>
    %cst_9 = arith.constant 0.000000e+00 : f32
    %8 = vector.broadcast %cst_9 : f32 to vector<2x32xf32>
    %c0_i32 = arith.constant 0 : i32
    %c8_i32 = arith.constant 8 : i32
    %9 = arith.addi %c0_i32, %c8_i32 : i32
    %c1_i32 = arith.constant 1 : i32
    %10:2 = scf.for %arg7 = %c0_i32 to %9 step %c1_i32 iter_args(%arg8 = %8, %arg9 = %8) -> (vector<2x32xf32>, vector<2x32xf32>)  : i32 {
      %cst_11 = arith.constant dense<0.000000e+00> : vector<2x128xf32>
      %11 = tpu.matmul %arg8, %7, %cst_11 {dimension_numbers = #tpu.dot_dimension_numbers<[1], [0], [0], [1], [0, 0, 1, 1], [], []>} : vector<2x32xf32>, vector<32x128xf32>, vector<2x128xf32> -> vector<2x128xf32>
      %c2_i32 = arith.constant 2 : i32
      %12 = arith.muli %arg7, %c2_i32 : i32
      %13 = arith.index_cast %12 : i32 to index
      %c0_12 = arith.constant 0 : index
      %14 = vector.load %arg6[%13, %c0_12] : memref<16x128xf32, #tpu.memory_space<vmem>>, vector<2x128xf32>
      %c7_i32 = arith.constant 7 : i32
      %15 = arith.subi %c7_i32, %arg7 : i32
      %c2_i32_13 = arith.constant 2 : i32
      %16 = arith.muli %15, %c2_i32_13 : i32
      %17 = arith.index_cast %16 : i32 to index
      %c0_14 = arith.constant 0 : index
      %18 = vector.load %arg6[%17, %c0_14] : memref<16x128xf32, #tpu.memory_space<vmem>>, vector<2x128xf32>
      %19 = vector.extract_strided_slice %14 {offsets = [0, 0], sizes = [2, 64], strides = [1, 1]} : vector<2x128xf32> to vector<2x64xf32>
      %20 = vector.extract_strided_slice %11 {offsets = [0, 0], sizes = [2, 64], strides = [1, 1]} : vector<2x128xf32> to vector<2x64xf32>
      %21 = arith.addf %19, %20 : vector<2x64xf32>
      %22 = vector.extract_strided_slice %18 {offsets = [0, 64], sizes = [2, 64], strides = [1, 1]} : vector<2x128xf32> to vector<2x64xf32>
      %23 = vector.extract_strided_slice %11 {offsets = [0, 64], sizes = [2, 64], strides = [1, 1]} : vector<2x128xf32> to vector<2x64xf32>
      %24 = arith.addf %22, %23 : vector<2x64xf32>
      %25 = vector.extract_strided_slice %21 {offsets = [0, 0], sizes = [2, 16], strides = [1, 1]} : vector<2x64xf32> to vector<2x16xf32>
      %26 = arith.negf %25 : vector<2x16xf32>
      %27 = math.exp %26 : vector<2x16xf32>
      %cst_15 = arith.constant 1.000000e+00 : f32
      %28 = vector.broadcast %cst_15 : f32 to vector<2x16xf32>
      %29 = arith.addf %28, %27 : vector<2x16xf32>
      %30 = arith.divf %28, %29 : vector<2x16xf32>
      %31 = vector.extract_strided_slice %21 {offsets = [0, 16], sizes = [2, 16], strides = [1, 1]} : vector<2x64xf32> to vector<2x16xf32>
      %32 = arith.negf %31 : vector<2x16xf32>
      %33 = math.exp %32 : vector<2x16xf32>
      %cst_16 = arith.constant 1.000000e+00 : f32
      %34 = vector.broadcast %cst_16 : f32 to vector<2x16xf32>
      %35 = arith.addf %34, %33 : vector<2x16xf32>
      %36 = arith.divf %34, %35 : vector<2x16xf32>
      %37 = vector.extract_strided_slice %21 {offsets = [0, 32], sizes = [2, 16], strides = [1, 1]} : vector<2x64xf32> to vector<2x16xf32>
      %38 = math.tanh %37 : vector<2x16xf32>
      %39 = vector.extract_strided_slice %21 {offsets = [0, 48], sizes = [2, 16], strides = [1, 1]} : vector<2x64xf32> to vector<2x16xf32>
      %40 = arith.negf %39 : vector<2x16xf32>
      %41 = math.exp %40 : vector<2x16xf32>
      %cst_17 = arith.constant 1.000000e+00 : f32
      %42 = vector.broadcast %cst_17 : f32 to vector<2x16xf32>
      %43 = arith.addf %42, %41 : vector<2x16xf32>
      %44 = arith.divf %42, %43 : vector<2x16xf32>
      %45 = vector.extract_strided_slice %24 {offsets = [0, 0], sizes = [2, 16], strides = [1, 1]} : vector<2x64xf32> to vector<2x16xf32>
      %46 = arith.negf %45 : vector<2x16xf32>
      %47 = math.exp %46 : vector<2x16xf32>
      %cst_18 = arith.constant 1.000000e+00 : f32
      %48 = vector.broadcast %cst_18 : f32 to vector<2x16xf32>
      %49 = arith.addf %48, %47 : vector<2x16xf32>
      %50 = arith.divf %48, %49 : vector<2x16xf32>
      %51 = vector.extract_strided_slice %24 {offsets = [0, 16], sizes = [2, 16], strides = [1, 1]} : vector<2x64xf32> to vector<2x16xf32>
      %52 = arith.negf %51 : vector<2x16xf32>
      %53 = math.exp %52 : vector<2x16xf32>
      %cst_19 = arith.constant 1.000000e+00 : f32
      %54 = vector.broadcast %cst_19 : f32 to vector<2x16xf32>
      %55 = arith.addf %54, %53 : vector<2x16xf32>
      %56 = arith.divf %54, %55 : vector<2x16xf32>
      %57 = vector.extract_strided_slice %24 {offsets = [0, 32], sizes = [2, 16], strides = [1, 1]} : vector<2x64xf32> to vector<2x16xf32>
      %58 = math.tanh %57 : vector<2x16xf32>
      %59 = vector.extract_strided_slice %24 {offsets = [0, 48], sizes = [2, 16], strides = [1, 1]} : vector<2x64xf32> to vector<2x16xf32>
      %60 = arith.negf %59 : vector<2x16xf32>
      %61 = math.exp %60 : vector<2x16xf32>
      %cst_20 = arith.constant 1.000000e+00 : f32
      %62 = vector.broadcast %cst_20 : f32 to vector<2x16xf32>
      %63 = arith.addf %62, %61 : vector<2x16xf32>
      %64 = arith.divf %62, %63 : vector<2x16xf32>
      %65 = vector.extract_strided_slice %arg9 {offsets = [0, 0], sizes = [2, 16], strides = [1, 1]} : vector<2x32xf32> to vector<2x16xf32>
      %66 = arith.mulf %36, %65 : vector<2x16xf32>
      %67 = arith.mulf %30, %38 : vector<2x16xf32>
      %68 = arith.addf %66, %67 : vector<2x16xf32>
      %69 = vector.extract_strided_slice %arg9 {offsets = [0, 16], sizes = [2, 16], strides = [1, 1]} : vector<2x32xf32> to vector<2x16xf32>
      %70 = arith.mulf %56, %69 : vector<2x16xf32>
      %71 = arith.mulf %50, %58 : vector<2x16xf32>
      %72 = arith.addf %70, %71 : vector<2x16xf32>
      %73 = math.tanh %68 : vector<2x16xf32>
      %74 = arith.mulf %44, %73 : vector<2x16xf32>
      %75 = math.tanh %72 : vector<2x16xf32>
      %76 = arith.mulf %64, %75 : vector<2x16xf32>
      %77 = arith.index_cast %arg7 : i32 to index
      %c0_21 = arith.constant 0 : index
      %c0_22 = arith.constant 0 : index
      %78 = vector.load %arg4[%77, %c0_21, %c0_22] : memref<8x2x16xf32, #tpu.memory_space<vmem>>, vector<1x2x16xf32>
      %79 = vector.shape_cast %78 : vector<1x2x16xf32> to vector<2x16xf32>
      %80 = vector.shape_cast %74 : vector<2x16xf32> to vector<1x2x16xf32>
      tpu.vector_store %arg4[%77, %c0_21, %c0_22], %80 {strides = array<i32>} : memref<8x2x16xf32, #tpu.memory_space<vmem>>, vector<1x2x16xf32>,
      %c7_i32_23 = arith.constant 7 : i32
      %81 = arith.subi %c7_i32_23, %arg7 : i32
      %82 = arith.index_cast %81 : i32 to index
      %c0_24 = arith.constant 0 : index
      %c0_25 = arith.constant 0 : index
      %83 = vector.load %arg5[%82, %c0_24, %c0_25] : memref<8x2x16xf32, #tpu.memory_space<vmem>>, vector<1x2x16xf32>
      %84 = vector.shape_cast %83 : vector<1x2x16xf32> to vector<2x16xf32>
      %85 = vector.shape_cast %76 : vector<2x16xf32> to vector<1x2x16xf32>
      tpu.vector_store %arg5[%82, %c0_24, %c0_25], %85 {strides = array<i32>} : memref<8x2x16xf32, #tpu.memory_space<vmem>>, vector<1x2x16xf32>,
      %86 = tpu.concatenate %74, %76 in 1 : vector<2x16xf32>, vector<2x16xf32> -> vector<2x32xf32>
      %87 = tpu.concatenate %68, %72 in 1 : vector<2x16xf32>, vector<2x16xf32> -> vector<2x32xf32>
      scf.yield %86, %87 : vector<2x32xf32>, vector<2x32xf32>
    }
    %c8_i32_10 = arith.constant 8 : i32
    return
  }
}

module attributes {stable_mosaic.version = 11 : i64} {
  func.func @_bmm_nt_kernel(%arg0: memref<2x8x32xf32, #tpu.memory_space<vmem>>, %arg1: memref<2x4x32xf32, #tpu.memory_space<vmem>>, %arg2: memref<2x8x4xf32, #tpu.memory_space<vmem>>) attributes {dimension_semantics = [], scalar_prefetch = 0 : i64, scratch_operands = 0 : i64, tpu.core_type = #tpu.core_type<tc>} {
    %c0 = arith.constant 0 : index
    %c0_0 = arith.constant 0 : index
    %c0_1 = arith.constant 0 : index
    %0 = vector.load %arg0[%c0, %c0_0, %c0_1] : memref<2x8x32xf32, #tpu.memory_space<vmem>>, vector<2x8x32xf32>
    %c0_2 = arith.constant 0 : index
    %c0_3 = arith.constant 0 : index
    %c0_4 = arith.constant 0 : index
    %1 = vector.load %arg1[%c0_2, %c0_3, %c0_4] : memref<2x4x32xf32, #tpu.memory_space<vmem>>, vector<2x4x32xf32>
    "tpu.trace_start"() <{level = 10 : i32, message = "bqd,bcd->bqc"}> : () -> ()
    %cst = arith.constant dense<0.000000e+00> : vector<2x8x4xf32>
    %2 = tpu.matmul %0, %1, %cst {dimension_numbers = #tpu.dot_dimension_numbers<[2], [2], [1], [1], [0, 0, 0, 1, 1, 1], [0], [0]>} : vector<2x8x32xf32>, vector<2x4x32xf32>, vector<2x8x4xf32> -> vector<2x8x4xf32>
    "tpu.trace_stop"() : () -> ()
    %c0_5 = arith.constant 0 : index
    %c0_6 = arith.constant 0 : index
    %c0_7 = arith.constant 0 : index
    %3 = vector.load %arg2[%c0_5, %c0_6, %c0_7] : memref<2x8x4xf32, #tpu.memory_space<vmem>>, vector<2x8x4xf32>
    tpu.vector_store %arg2[%c0_5, %c0_6, %c0_7], %2 {strides = array<i32>} : memref<2x8x4xf32, #tpu.memory_space<vmem>>, vector<2x8x4xf32>,
    return
  }
}

module attributes {stable_mosaic.version = 11 : i64} {
  func.func @_bilstm_kernel(%arg0: memref<8x40xf32, #tpu.memory_space<vmem>>, %arg1: memref<40x128xf32, #tpu.memory_space<vmem>>, %arg2: memref<32x128xf32, #tpu.memory_space<vmem>>, %arg3: memref<1x128xf32, #tpu.memory_space<vmem>>, %arg4: memref<4x2x16xf32, #tpu.memory_space<vmem>>, %arg5: memref<4x2x16xf32, #tpu.memory_space<vmem>>, %arg6: memref<8x128xf32, #tpu.memory_space<vmem>>) attributes {dimension_semantics = [], scalar_prefetch = 0 : i64, scratch_operands = 1 : i64, tpu.core_type = #tpu.core_type<tc>} {
    %c0 = arith.constant 0 : index
    %c0_0 = arith.constant 0 : index
    %0 = vector.load %arg0[%c0, %c0_0] : memref<8x40xf32, #tpu.memory_space<vmem>>, vector<8x40xf32>
    %c0_1 = arith.constant 0 : index
    %c0_2 = arith.constant 0 : index
    %1 = vector.load %arg1[%c0_1, %c0_2] : memref<40x128xf32, #tpu.memory_space<vmem>>, vector<40x128xf32>
    %cst = arith.constant dense<0.000000e+00> : vector<8x128xf32>
    %2 = tpu.matmul %0, %1, %cst {dimension_numbers = #tpu.dot_dimension_numbers<[1], [0], [0], [1], [0, 0, 1, 1], [], []>} : vector<8x40xf32>, vector<40x128xf32>, vector<8x128xf32> -> vector<8x128xf32>
    %c0_3 = arith.constant 0 : index
    %c0_4 = arith.constant 0 : index
    %3 = vector.load %arg3[%c0_3, %c0_4] : memref<1x128xf32, #tpu.memory_space<vmem>>, vector<1x128xf32>
    %4 = vector.broadcast %3 : vector<1x128xf32> to vector<8x128xf32>
    %5 = arith.addf %2, %4 : vector<8x128xf32>
    %c0_5 = arith.constant 0 : index
    %c0_6 = arith.constant 0 : index
    %6 = vector.load %arg6[%c0_5, %c0_6] : memref<8x128xf32, #tpu.memory_space<vmem>>, vector<8x128xf32>
    tpu.vector_store %arg6[%c0_5, %c0_6], %5 {strides = array<i32>} : memref<8x128xf32, #tpu.memory_space<vmem>>, vector<8x128xf32>,
    %c0_7 = arith.constant 0 : index
    %c0_8 = arith.constant 0 : index
    %7 = vector.load %arg2[%c0_7, %c0_8] : memref<32x128xf32, #tpu.memory_space<vmem>>, vector<32x128xf32>
    %cst_9 = arith.constant 0.000000e+00 : f32
    %8 = vector.broadcast %cst_9 : f32 to vector<2x32xf32>
    %c0_i32 = arith.constant 0 : i32
    %c4_i32 = arith.constant 4 : i32
    %9 = arith.addi %c0_i32, %c4_i32 : i32
    %c1_i32 = arith.constant 1 : i32
    %10:2 = scf.for %arg7 = %c0_i32 to %9 step %c1_i32 iter_args(%arg8 = %8, %arg9 = %8) -> (vector<2x32xf32>, vector<2x32xf32>)  : i32 {
      %cst_11 = arith.constant dense<0.000000e+00> : vector<2x128xf32>
      %11 = tpu.matmul %arg8, %7, %cst_11 {dimension_numbers = #tpu.dot_dimension_numbers<[1], [0], [0], [1], [0, 0, 1, 1], [], []>} : vector<2x32xf32>, vector<32x128xf32>, vector<2x128xf32> -> vector<2x128xf32>
      %c2_i32 = arith.constant 2 : i32
      %12 = arith.muli %arg7, %c2_i32 : i32
      %13 = arith.index_cast %12 : i32 to index
      %c0_12 = arith.constant 0 : index
      %14 = vector.load %arg6[%13, %c0_12] : memref<8x128xf32, #tpu.memory_space<vmem>>, vector<2x128xf32>
      %c3_i32 = arith.constant 3 : i32
      %15 = arith.subi %c3_i32, %arg7 : i32
      %c2_i32_13 = arith.constant 2 : i32
      %16 = arith.muli %15, %c2_i32_13 : i32
      %17 = arith.index_cast %16 : i32 to index
      %c0_14 = arith.constant 0 : index
      %18 = vector.load %arg6[%17, %c0_14] : memref<8x128xf32, #tpu.memory_space<vmem>>, vector<2x128xf32>
      %19 = vector.extract_strided_slice %14 {offsets = [0, 0], sizes = [2, 64], strides = [1, 1]} : vector<2x128xf32> to vector<2x64xf32>
      %20 = vector.extract_strided_slice %11 {offsets = [0, 0], sizes = [2, 64], strides = [1, 1]} : vector<2x128xf32> to vector<2x64xf32>
      %21 = arith.addf %19, %20 : vector<2x64xf32>
      %22 = vector.extract_strided_slice %18 {offsets = [0, 64], sizes = [2, 64], strides = [1, 1]} : vector<2x128xf32> to vector<2x64xf32>
      %23 = vector.extract_strided_slice %11 {offsets = [0, 64], sizes = [2, 64], strides = [1, 1]} : vector<2x128xf32> to vector<2x64xf32>
      %24 = arith.addf %22, %23 : vector<2x64xf32>
      %25 = vector.extract_strided_slice %21 {offsets = [0, 0], sizes = [2, 16], strides = [1, 1]} : vector<2x64xf32> to vector<2x16xf32>
      %26 = arith.negf %25 : vector<2x16xf32>
      %27 = math.exp %26 : vector<2x16xf32>
      %cst_15 = arith.constant 1.000000e+00 : f32
      %28 = vector.broadcast %cst_15 : f32 to vector<2x16xf32>
      %29 = arith.addf %28, %27 : vector<2x16xf32>
      %30 = arith.divf %28, %29 : vector<2x16xf32>
      %31 = vector.extract_strided_slice %21 {offsets = [0, 16], sizes = [2, 16], strides = [1, 1]} : vector<2x64xf32> to vector<2x16xf32>
      %32 = arith.negf %31 : vector<2x16xf32>
      %33 = math.exp %32 : vector<2x16xf32>
      %cst_16 = arith.constant 1.000000e+00 : f32
      %34 = vector.broadcast %cst_16 : f32 to vector<2x16xf32>
      %35 = arith.addf %34, %33 : vector<2x16xf32>
      %36 = arith.divf %34, %35 : vector<2x16xf32>
      %37 = vector.extract_strided_slice %21 {offsets = [0, 32], sizes = [2, 16], strides = [1, 1]} : vector<2x64xf32> to vector<2x16xf32>
      %38 = math.tanh %37 : vector<2x16xf32>
      %39 = vector.extract_strided_slice %21 {offsets = [0, 48], sizes = [2, 16], strides = [1, 1]} : vector<2x64xf32> to vector<2x16xf32>
      %40 = arith.negf %39 : vector<2x16xf32>
      %41 = math.exp %40 : vector<2x16xf32>
      %cst_17 = arith.constant 1.000000e+00 : f32
      %42 = vector.broadcast %cst_17 : f32 to vector<2x16xf32>
      %43 = arith.addf %42, %41 : vector<2x16xf32>
      %44 = arith.divf %42, %43 : vector<2x16xf32>
      %45 = vector.extract_strided_slice %24 {offsets = [0, 0], sizes = [2, 16], strides = [1, 1]} : vector<2x64xf32> to vector<2x16xf32>
      %46 = arith.negf %45 : vector<2x16xf32>
      %47 = math.exp %46 : vector<2x16xf32>
      %cst_18 = arith.constant 1.000000e+00 : f32
      %48 = vector.broadcast %cst_18 : f32 to vector<2x16xf32>
      %49 = arith.addf %48, %47 : vector<2x16xf32>
      %50 = arith.divf %48, %49 : vector<2x16xf32>
      %51 = vector.extract_strided_slice %24 {offsets = [0, 16], sizes = [2, 16], strides = [1, 1]} : vector<2x64xf32> to vector<2x16xf32>
      %52 = arith.negf %51 : vector<2x16xf32>
      %53 = math.exp %52 : vector<2x16xf32>
      %cst_19 = arith.constant 1.000000e+00 : f32
      %54 = vector.broadcast %cst_19 : f32 to vector<2x16xf32>
      %55 = arith.addf %54, %53 : vector<2x16xf32>
      %56 = arith.divf %54, %55 : vector<2x16xf32>
      %57 = vector.extract_strided_slice %24 {offsets = [0, 32], sizes = [2, 16], strides = [1, 1]} : vector<2x64xf32> to vector<2x16xf32>
      %58 = math.tanh %57 : vector<2x16xf32>
      %59 = vector.extract_strided_slice %24 {offsets = [0, 48], sizes = [2, 16], strides = [1, 1]} : vector<2x64xf32> to vector<2x16xf32>
      %60 = arith.negf %59 : vector<2x16xf32>
      %61 = math.exp %60 : vector<2x16xf32>
      %cst_20 = arith.constant 1.000000e+00 : f32
      %62 = vector.broadcast %cst_20 : f32 to vector<2x16xf32>
      %63 = arith.addf %62, %61 : vector<2x16xf32>
      %64 = arith.divf %62, %63 : vector<2x16xf32>
      %65 = vector.extract_strided_slice %arg9 {offsets = [0, 0], sizes = [2, 16], strides = [1, 1]} : vector<2x32xf32> to vector<2x16xf32>
      %66 = arith.mulf %36, %65 : vector<2x16xf32>
      %67 = arith.mulf %30, %38 : vector<2x16xf32>
      %68 = arith.addf %66, %67 : vector<2x16xf32>
      %69 = vector.extract_strided_slice %arg9 {offsets = [0, 16], sizes = [2, 16], strides = [1, 1]} : vector<2x32xf32> to vector<2x16xf32>
      %70 = arith.mulf %56, %69 : vector<2x16xf32>
      %71 = arith.mulf %50, %58 : vector<2x16xf32>
      %72 = arith.addf %70, %71 : vector<2x16xf32>
      %73 = math.tanh %68 : vector<2x16xf32>
      %74 = arith.mulf %44, %73 : vector<2x16xf32>
      %75 = math.tanh %72 : vector<2x16xf32>
      %76 = arith.mulf %64, %75 : vector<2x16xf32>
      %77 = arith.index_cast %arg7 : i32 to index
      %c0_21 = arith.constant 0 : index
      %c0_22 = arith.constant 0 : index
      %78 = vector.load %arg4[%77, %c0_21, %c0_22] : memref<4x2x16xf32, #tpu.memory_space<vmem>>, vector<1x2x16xf32>
      %79 = vector.shape_cast %78 : vector<1x2x16xf32> to vector<2x16xf32>
      %80 = vector.shape_cast %74 : vector<2x16xf32> to vector<1x2x16xf32>
      tpu.vector_store %arg4[%77, %c0_21, %c0_22], %80 {strides = array<i32>} : memref<4x2x16xf32, #tpu.memory_space<vmem>>, vector<1x2x16xf32>,
      %c3_i32_23 = arith.constant 3 : i32
      %81 = arith.subi %c3_i32_23, %arg7 : i32
      %82 = arith.index_cast %81 : i32 to index
      %c0_24 = arith.constant 0 : index
      %c0_25 = arith.constant 0 : index
      %83 = vector.load %arg5[%82, %c0_24, %c0_25] : memref<4x2x16xf32, #tpu.memory_space<vmem>>, vector<1x2x16xf32>
      %84 = vector.shape_cast %83 : vector<1x2x16xf32> to vector<2x16xf32>
      %85 = vector.shape_cast %76 : vector<2x16xf32> to vector<1x2x16xf32>
      tpu.vector_store %arg5[%82, %c0_24, %c0_25], %85 {strides = array<i32>} : memref<4x2x16xf32, #tpu.memory_space<vmem>>, vector<1x2x16xf32>,
      %86 = tpu.concatenate %74, %76 in 1 : vector<2x16xf32>, vector<2x16xf32> -> vector<2x32xf32>
      %87 = tpu.concatenate %68, %72 in 1 : vector<2x16xf32>, vector<2x16xf32> -> vector<2x32xf32>
      scf.yield %86, %87 : vector<2x32xf32>, vector<2x32xf32>
    }
    %c4_i32_10 = arith.constant 4 : i32
    return
  }
}

module attributes {stable_mosaic.version = 11 : i64} {
  func.func @_bilstm_kernel(%arg0: memref<16x36xf32, #tpu.memory_space<vmem>>, %arg1: memref<36x128xf32, #tpu.memory_space<vmem>>, %arg2: memref<32x128xf32, #tpu.memory_space<vmem>>, %arg3: memref<1x128xf32, #tpu.memory_space<vmem>>, %arg4: memref<8x2x16xf32, #tpu.memory_space<vmem>>, %arg5: memref<8x2x16xf32, #tpu.memory_space<vmem>>, %arg6: memref<16x128xf32, #tpu.memory_space<vmem>>) attributes {dimension_semantics = [], scalar_prefetch = 0 : i64, scratch_operands = 1 : i64, tpu.core_type = #tpu.core_type<tc>} {
    %c0 = arith.constant 0 : index
    %c0_0 = arith.constant 0 : index
    %0 = vector.load %arg0[%c0, %c0_0] : memref<16x36xf32, #tpu.memory_space<vmem>>, vector<16x36xf32>
    %c0_1 = arith.constant 0 : index
    %c0_2 = arith.constant 0 : index
    %1 = vector.load %arg1[%c0_1, %c0_2] : memref<36x128xf32, #tpu.memory_space<vmem>>, vector<36x128xf32>
    %cst = arith.constant dense<0.000000e+00> : vector<16x128xf32>
    %2 = tpu.matmul %0, %1, %cst {dimension_numbers = #tpu.dot_dimension_numbers<[1], [0], [0], [1], [0, 0, 1, 1], [], []>} : vector<16x36xf32>, vector<36x128xf32>, vector<16x128xf32> -> vector<16x128xf32>
    %c0_3 = arith.constant 0 : index
    %c0_4 = arith.constant 0 : index
    %3 = vector.load %arg3[%c0_3, %c0_4] : memref<1x128xf32, #tpu.memory_space<vmem>>, vector<1x128xf32>
    %4 = vector.broadcast %3 : vector<1x128xf32> to vector<16x128xf32>
    %5 = arith.addf %2, %4 : vector<16x128xf32>
    %c0_5 = arith.constant 0 : index
    %c0_6 = arith.constant 0 : index
    %6 = vector.load %arg6[%c0_5, %c0_6] : memref<16x128xf32, #tpu.memory_space<vmem>>, vector<16x128xf32>
    tpu.vector_store %arg6[%c0_5, %c0_6], %5 {strides = array<i32>} : memref<16x128xf32, #tpu.memory_space<vmem>>, vector<16x128xf32>,
    %c0_7 = arith.constant 0 : index
    %c0_8 = arith.constant 0 : index
    %7 = vector.load %arg2[%c0_7, %c0_8] : memref<32x128xf32, #tpu.memory_space<vmem>>, vector<32x128xf32>
    %cst_9 = arith.constant 0.000000e+00 : f32
    %8 = vector.broadcast %cst_9 : f32 to vector<2x32xf32>
    %c0_i32 = arith.constant 0 : i32
    %c8_i32 = arith.constant 8 : i32
    %9 = arith.addi %c0_i32, %c8_i32 : i32
    %c1_i32 = arith.constant 1 : i32
    %10:2 = scf.for %arg7 = %c0_i32 to %9 step %c1_i32 iter_args(%arg8 = %8, %arg9 = %8) -> (vector<2x32xf32>, vector<2x32xf32>)  : i32 {
      %cst_11 = arith.constant dense<0.000000e+00> : vector<2x128xf32>
      %11 = tpu.matmul %arg8, %7, %cst_11 {dimension_numbers = #tpu.dot_dimension_numbers<[1], [0], [0], [1], [0, 0, 1, 1], [], []>} : vector<2x32xf32>, vector<32x128xf32>, vector<2x128xf32> -> vector<2x128xf32>
      %c2_i32 = arith.constant 2 : i32
      %12 = arith.muli %arg7, %c2_i32 : i32
      %13 = arith.index_cast %12 : i32 to index
      %c0_12 = arith.constant 0 : index
      %14 = vector.load %arg6[%13, %c0_12] : memref<16x128xf32, #tpu.memory_space<vmem>>, vector<2x128xf32>
      %c7_i32 = arith.constant 7 : i32
      %15 = arith.subi %c7_i32, %arg7 : i32
      %c2_i32_13 = arith.constant 2 : i32
      %16 = arith.muli %15, %c2_i32_13 : i32
      %17 = arith.index_cast %16 : i32 to index
      %c0_14 = arith.constant 0 : index
      %18 = vector.load %arg6[%17, %c0_14] : memref<16x128xf32, #tpu.memory_space<vmem>>, vector<2x128xf32>
      %19 = vector.extract_strided_slice %14 {offsets = [0, 0], sizes = [2, 64], strides = [1, 1]} : vector<2x128xf32> to vector<2x64xf32>
      %20 = vector.extract_strided_slice %11 {offsets = [0, 0], sizes = [2, 64], strides = [1, 1]} : vector<2x128xf32> to vector<2x64xf32>
      %21 = arith.addf %19, %20 : vector<2x64xf32>
      %22 = vector.extract_strided_slice %18 {offsets = [0, 64], sizes = [2, 64], strides = [1, 1]} : vector<2x128xf32> to vector<2x64xf32>
      %23 = vector.extract_strided_slice %11 {offsets = [0, 64], sizes = [2, 64], strides = [1, 1]} : vector<2x128xf32> to vector<2x64xf32>
      %24 = arith.addf %22, %23 : vector<2x64xf32>
      %25 = vector.extract_strided_slice %21 {offsets = [0, 0], sizes = [2, 16], strides = [1, 1]} : vector<2x64xf32> to vector<2x16xf32>
      %26 = arith.negf %25 : vector<2x16xf32>
      %27 = math.exp %26 : vector<2x16xf32>
      %cst_15 = arith.constant 1.000000e+00 : f32
      %28 = vector.broadcast %cst_15 : f32 to vector<2x16xf32>
      %29 = arith.addf %28, %27 : vector<2x16xf32>
      %30 = arith.divf %28, %29 : vector<2x16xf32>
      %31 = vector.extract_strided_slice %21 {offsets = [0, 16], sizes = [2, 16], strides = [1, 1]} : vector<2x64xf32> to vector<2x16xf32>
      %32 = arith.negf %31 : vector<2x16xf32>
      %33 = math.exp %32 : vector<2x16xf32>
      %cst_16 = arith.constant 1.000000e+00 : f32
      %34 = vector.broadcast %cst_16 : f32 to vector<2x16xf32>
      %35 = arith.addf %34, %33 : vector<2x16xf32>
      %36 = arith.divf %34, %35 : vector<2x16xf32>
      %37 = vector.extract_strided_slice %21 {offsets = [0, 32], sizes = [2, 16], strides = [1, 1]} : vector<2x64xf32> to vector<2x16xf32>
      %38 = math.tanh %37 : vector<2x16xf32>
      %39 = vector.extract_strided_slice %21 {offsets = [0, 48], sizes = [2, 16], strides = [1, 1]} : vector<2x64xf32> to vector<2x16xf32>
      %40 = arith.negf %39 : vector<2x16xf32>
      %41 = math.exp %40 : vector<2x16xf32>
      %cst_17 = arith.constant 1.000000e+00 : f32
      %42 = vector.broadcast %cst_17 : f32 to vector<2x16xf32>
      %43 = arith.addf %42, %41 : vector<2x16xf32>
      %44 = arith.divf %42, %43 : vector<2x16xf32>
      %45 = vector.extract_strided_slice %24 {offsets = [0, 0], sizes = [2, 16], strides = [1, 1]} : vector<2x64xf32> to vector<2x16xf32>
      %46 = arith.negf %45 : vector<2x16xf32>
      %47 = math.exp %46 : vector<2x16xf32>
      %cst_18 = arith.constant 1.000000e+00 : f32
      %48 = vector.broadcast %cst_18 : f32 to vector<2x16xf32>
      %49 = arith.addf %48, %47 : vector<2x16xf32>
      %50 = arith.divf %48, %49 : vector<2x16xf32>
      %51 = vector.extract_strided_slice %24 {offsets = [0, 16], sizes = [2, 16], strides = [1, 1]} : vector<2x64xf32> to vector<2x16xf32>
      %52 = arith.negf %51 : vector<2x16xf32>
      %53 = math.exp %52 : vector<2x16xf32>
      %cst_19 = arith.constant 1.000000e+00 : f32
      %54 = vector.broadcast %cst_19 : f32 to vector<2x16xf32>
      %55 = arith.addf %54, %53 : vector<2x16xf32>
      %56 = arith.divf %54, %55 : vector<2x16xf32>
      %57 = vector.extract_strided_slice %24 {offsets = [0, 32], sizes = [2, 16], strides = [1, 1]} : vector<2x64xf32> to vector<2x16xf32>
      %58 = math.tanh %57 : vector<2x16xf32>
      %59 = vector.extract_strided_slice %24 {offsets = [0, 48], sizes = [2, 16], strides = [1, 1]} : vector<2x64xf32> to vector<2x16xf32>
      %60 = arith.negf %59 : vector<2x16xf32>
      %61 = math.exp %60 : vector<2x16xf32>
      %cst_20 = arith.constant 1.000000e+00 : f32
      %62 = vector.broadcast %cst_20 : f32 to vector<2x16xf32>
      %63 = arith.addf %62, %61 : vector<2x16xf32>
      %64 = arith.divf %62, %63 : vector<2x16xf32>
      %65 = vector.extract_strided_slice %arg9 {offsets = [0, 0], sizes = [2, 16], strides = [1, 1]} : vector<2x32xf32> to vector<2x16xf32>
      %66 = arith.mulf %36, %65 : vector<2x16xf32>
      %67 = arith.mulf %30, %38 : vector<2x16xf32>
      %68 = arith.addf %66, %67 : vector<2x16xf32>
      %69 = vector.extract_strided_slice %arg9 {offsets = [0, 16], sizes = [2, 16], strides = [1, 1]} : vector<2x32xf32> to vector<2x16xf32>
      %70 = arith.mulf %56, %69 : vector<2x16xf32>
      %71 = arith.mulf %50, %58 : vector<2x16xf32>
      %72 = arith.addf %70, %71 : vector<2x16xf32>
      %73 = math.tanh %68 : vector<2x16xf32>
      %74 = arith.mulf %44, %73 : vector<2x16xf32>
      %75 = math.tanh %72 : vector<2x16xf32>
      %76 = arith.mulf %64, %75 : vector<2x16xf32>
      %77 = arith.index_cast %arg7 : i32 to index
      %c0_21 = arith.constant 0 : index
      %c0_22 = arith.constant 0 : index
      %78 = vector.load %arg4[%77, %c0_21, %c0_22] : memref<8x2x16xf32, #tpu.memory_space<vmem>>, vector<1x2x16xf32>
      %79 = vector.shape_cast %78 : vector<1x2x16xf32> to vector<2x16xf32>
      %80 = vector.shape_cast %74 : vector<2x16xf32> to vector<1x2x16xf32>
      tpu.vector_store %arg4[%77, %c0_21, %c0_22], %80 {strides = array<i32>} : memref<8x2x16xf32, #tpu.memory_space<vmem>>, vector<1x2x16xf32>,
      %c7_i32_23 = arith.constant 7 : i32
      %81 = arith.subi %c7_i32_23, %arg7 : i32
      %82 = arith.index_cast %81 : i32 to index
      %c0_24 = arith.constant 0 : index
      %c0_25 = arith.constant 0 : index
      %83 = vector.load %arg5[%82, %c0_24, %c0_25] : memref<8x2x16xf32, #tpu.memory_space<vmem>>, vector<1x2x16xf32>
      %84 = vector.shape_cast %83 : vector<1x2x16xf32> to vector<2x16xf32>
      %85 = vector.shape_cast %76 : vector<2x16xf32> to vector<1x2x16xf32>
      tpu.vector_store %arg5[%82, %c0_24, %c0_25], %85 {strides = array<i32>} : memref<8x2x16xf32, #tpu.memory_space<vmem>>, vector<1x2x16xf32>,
      %86 = tpu.concatenate %74, %76 in 1 : vector<2x16xf32>, vector<2x16xf32> -> vector<2x32xf32>
      %87 = tpu.concatenate %68, %72 in 1 : vector<2x16xf32>, vector<2x16xf32> -> vector<2x32xf32>
      scf.yield %86, %87 : vector<2x32xf32>, vector<2x32xf32>
    }
    %c8_i32_10 = arith.constant 8 : i32
    return
  }
}

</mosaic_0001>

<bundles_post_ra>
// kernel: encoder_forward.6
= control target key start
LH: loop header
LB: loop body
LE: loop exit
PB: predicated region body
PF: predicated region fallthrough
CT: control target
= control target key end

     0   :  { %v456_v0 = vmov 0.0|0.0   ;;  %vm457_vm0 = vmmov 0   ;;  %v458_v4 = vmov 0.0   ;;  %vm31_vm1 = vcmask 130048   ;;  %s587_s1 = inlined_call_operand.vmem [shape: f32[16,128], index: 1, kind: input, shape index: {}]   ;;  %s588_s4 = inlined_call_operand.vmem [shape: f32[3,8,16], index: 4, kind: output, shape index: {0}]   ;;  %s589_s5 = inlined_call_operand.vmem [shape: f32[3,8,16], index: 5, kind: output, shape index: {1}]   ;;  %s590_s0 = inlined_call_operand.vmem [shape: f32[24,16], index: 0, kind: input, shape index: {}]   ;;  %s591_s2 = inlined_call_operand.vmem [shape: f32[32,128], index: 2, kind: input, shape index: {}]   ;;  %s592_s3 = inlined_call_operand.vmem [shape: f32[1,128], index: 3, kind: input, shape index: {}]  }
   0x1   :  { %378 = vmatprep.subr.bf16.mxu1 %v456_v0  ;;  %v22_v1 = vld [vmem:[%s587_s1] sm:$0xff]  ;;  %v23_v2 = vld [vmem:[%s587_s1 + $0x8] sm:$0xff]  ;;  %369 = vmatprep.subr.bf16.mxu0 %v456_v0  ;;  %v21_v7 = vld [vmem:[%s590_s0 + $0x10] sm:$0xff]  ;;  %v539_v22 = vmov 0.0   ;;  %v541_v23 = vmov 0.0  }
   0x2   :  { %v370_v3 = vpack.c.bf16 %v23_v2, %v22_v1  ;;  %352 = vmatprep.mubr.msk.f32.mxu1 %vm457_vm0, %v458_v4  ;;  %349 = vmatprep.mubr.msk.f32.mxu0 %vm457_vm0, %v458_v4  ;;  %v20_v5 = vld [vmem:[%s590_s0 + $0x8] sm:$0xff]  ;;  %v19_v6 = vld [vmem:[%s590_s0] sm:$0xff]  ;;  %v529_v10 = vld [vmem:[%s591_s2 + $0x10] sm:$0xff] }
   0x3   :  { %v519_v8 = vld [vmem:[%s591_s2] sm:$0xff]  ;;  %v524_v9 = vld [vmem:[%s591_s2 + $0x8] sm:$0xff]  ;;  %v534_v11 = vld [vmem:[%s591_s2 + $0x18] sm:$0xff]  ;;  %s543_s2 = smov 0  }
   0x4   :  { %379 = vmatpush3.bf16.msra.mxu1 %v370_v3  ;;  %371 = vmatpush3.bf16.msra.mxu0 %v370_v3  ;;  %v326_v12 = vld [vmem:[%s592_s3] ss:$0 sm:$0xff] }
   0x7   :  { %353 = vmatmul.mubr.msk.f32.vlgmr.msra.gmra.mrb[0].mxu1 %vm31_vm1, %v20_v5  ;;  %350 = vmatmul.mubr.msk.f32.vlgmr.msra.gmra.mrb[0].mxu0 %vm31_vm1, %v19_v6 }
   0x8   :  { %355 = vmatprep.mubr.msk.f32.mxu1 %vm457_vm0, %v458_v4 }
   0xb   :  { %356 = vmatmul.mubr.msk.f32.gmra.mrb[2].mxu1 %vm31_vm1, %v21_v7 }
  0xda   :  { %v112_v13 = vpop.f32.mrb[0].mxu1  ;;  %v107_v14 = vpop.f32.mrb[0].mxu0 }
  0xdb   :  { %v113_v15 = vadd.f32 %v326_v12, %v112_v13  ;;  %v354_v16 = vpop.f32.mrb[1].mxu1  ;;  %v108_v17 = vadd.f32 %v326_v12, %v107_v14  ;;  %v351_v18 = vpop.f32.mrb[1].mxu0 }
  0xdd   :  { %122 = vst [vmem:[#allocation2 + $0x8] sm:$0xff] %v113_v15  ;;  %121 = vst [vmem:[#allocation2] sm:$0xff] %v108_v17 }
  0xde   :  { %v117_v19 = vpop.f32.mrb[2].mxu1 }
  0xdf   :  { %v118_v20 = vadd.f32 %v326_v12, %v117_v19  ;;  %v357_v21 = vpop.f32.mrb[3].mxu1 }
  0xe1   :  { %123 = vst [vmem:[#allocation2 + $0x10] sm:$0xff] %v118_v20 }
  0xe2 LB: > { %v373_v24 = vpack.c.bf16 %v524_v9, %v519_v8  ;;  %v459_v25 = vmov 0.0|0.0   ;;  %v376_v26 = vpack.c.bf16 %v534_v11, %v529_v10  ;;  %vm460_vm2 = vmmov 0   ;;  %s462_s3 = smov 16   ;;  %s463_s11 = smov 64   ;;  %s454_s2 = sphi %s543_s2, %s133_s2   ;;  %v450_v23 = vphi %v541_v23, %v289_v23   ;;  %v446_v22 = vphi %v539_v22, %v298_v22  }
  0xe3   : > { %372 = vmatprep.subr.bf16.mxu0 %v459_v25  ;;  %v461_v27 = vmov 0.0   ;;  %234 = vrot.lane.b32.xlu1 %v446_v22, %s462_s3  ;;  %vm136_vm3 = vcmask 261120   ;;  %s213_s12 = ssub.s32 2, %s454_s2  ;;  %s331_s13 = sshll.u32 %s454_s2, 3 }
  0xe4   : > { %374 = vmatpush3.bf16.msra.mxu0 %v373_v24  ;;  %366 = vmatprep.mubr.msk.f32.mxu0 %vm460_vm2, %v461_v27  ;;  %s558_s14 = sshll.u32 %s213_s12, 3  ;;  %s211_s15 = scalar_lea.vmem [#allocation2], %s331_s13 }
  0xe5   : > { %375 = vmatprep.subr.bf16.mxu0 %v459_v25  ;;  %s215_s16 = scalar_lea.vmem [#allocation2], %s558_s14  ;;  %s464_s17 = smov 96  }
  0xe6   : > { %s465_s18 = smov 32   ;;  %s466_s19 = smov 80  }
  0xe7   : > { %248 = vrot.lane.b32.xlu1 %v446_v22, %s463_s11  ;;  %s467_s20 = smov 112   ;;  %s278_s23 = scalar_lea.vmem %s588_s4, %s331_s13 }
  0xe8   : > { %377 = vmatpush3.bf16.msra.mxu0 %v376_v26  ;;  %v212_v28 = vld [vmem:[%s211_s15] sm:$0xff]  ;;  %s284_s1 = scalar_lea.vmem %s589_s5, %s558_s14  ;;  %s133_s2 = sadd.s32 1, %s454_s2  }
  0xe9   : > { %v216_v30 = vld [vmem:[%s215_s16] sm:$0xff]  ;;  %p130_p0 = scmp.ge.s32.totalorder %s133_s2, 3  }
  0xeb   : > { %367 = vmatmul.mubr.msk.f32.vlgmr.msra.gmra.mrb[0].mxu0 %vm136_vm3, %v450_v23 }
 0x155   : > { %v235_v48 = vpop.permute.xlu1 %234 }
 0x159   : > { %v249_v50 = vpop.permute.xlu1 %248 }
 0x1be   : > { %v206_v29 = vpop.f32.mrb[0].mxu0 }
 0x1bf   : > { %v217_v31 = vadd.f32 %v212_v28, %v206_v29  ;;  %v368_v32 = vpop.f32.mrb[1].mxu0  ;;  %v218_v33 = vadd.f32 %v216_v30, %v206_v29 }
 0x1c1   : > { %416 = vtanh.f32 %v217_v31  ;;  %v333_v36 = vmul.f32 -1.442695, %v217_v31  ;;  %v334_v37 = vmul.f32 -1.442695, %v218_v33 }
 0x1c2   : > { %418 = vtanh.f32 %v218_v33 }
 0x1c3   : > { %420 = vpow2.f32 %v333_v36 }
 0x1c4   : > { %422 = vpow2.f32 %v334_v37 }
 0x1cb   : > { %v417_v34 = vpop.eup %416 }
 0x1cc   : > { %239 = vrot.lane.b32.xlu0 %v417_v34, %s464_s17  ;;  %v419_v35 = vpop.eup %418 }
 0x1cd   : > { %v421_v38 = vpop.eup %420 }
 0x1ce   : > { %v222_v39 = vadd.f32 1.0, %v421_v38  ;;  %v423_v40 = vpop.eup %422 }
 0x1cf   : > { %v229_v41 = vadd.f32 1.0, %v423_v40 }
 0x1d0   : > { %253 = vrot.lane.b32.xlu0 %v419_v35, %s464_s17  ;;  %424 = vrcp.f32 %v222_v39 }
 0x1d1   : > { %426 = vrcp.f32 %v229_v41 }
 0x1da   : > { %v425_v42 = vpop.eup %424 }
 0x1db   : > { %v427_v45 = vpop.eup %426  ;;  %v237_v49 = vmul.f32 %v425_v42, %v235_v48 }
 0x1dc   : > { %v251_v53 = vmul.f32 %v427_v45, %v249_v50 }
 0x23e   : > { %v240_v43 = vpop.permute.xlu0 %239 }
 0x23f   : > { %v242_v44 = vmul.f32 %v425_v42, %v240_v43 }
 0x241   : > { %244 = vrot.lane.b32.xlu0 %v242_v44, %s462_s3 }
 0x242   : > { %v254_v46 = vpop.permute.xlu0 %253 }
 0x243   : > { %v256_v47 = vmul.f32 %v427_v45, %v254_v46 }
 0x245   : > { %258 = vrot.lane.b32.xlu1 %v256_v47, %s462_s3 }
 0x2b3   : > { %v245_v51 = vpop.permute.xlu0 %244 }
 0x2b4   : > { %v247_v52 = vadd.f32 %v245_v51, %v237_v49 }
 0x2b6   : > { %428 = vtanh.f32 %v247_v52 }
 0x2b7   : > { %v259_v54 = vpop.permute.xlu1 %258 }
 0x2b8   : > { %v261_v55 = vadd.f32 %v259_v54, %v251_v53 }
 0x2ba   : > { %430 = vtanh.f32 %v261_v55 }
 0x2c0   : > { %v429_v56 = vpop.eup %428 }
 0x2c1   : > { %264 = vrot.lane.b32.xlu0 %v429_v56, %s465_s18 }
 0x2c4   : > { %v431_v57 = vpop.eup %430 }
 0x2c5   : > { %270 = vrot.lane.b32.xlu1 %v431_v57, %s465_s18 }
 0x333   : > { %v265_v58 = vpop.permute.xlu0 %264 }
 0x334   : > { %v267_v59 = vmul.f32 %v425_v42, %v265_v58 }
 0x336   : > { %275 = vrot.lane.b32.xlu0 %v267_v59, %s466_s19 }
 0x337   : > { %v271_v60 = vpop.permute.xlu1 %270 }
 0x338   : > { %v273_v61 = vmul.f32 %v427_v45, %v271_v60 }
 0x33a   : > { %286 = vrot.lane.b32.xlu0 %v273_v61, %s465_s18  ;;  %281 = vrot.lane.b32.xlu1 %v273_v61, %s462_s3 }
 0x33e   : > { %295 = vrot.lane.b32.xlu0 %v261_v55, %s463_s11  ;;  %291 = vrot.lane.b32.xlu1 %v247_v52, %s467_s20 }
 0x3a8   : > { %v276_v62 = vpop.permute.xlu0 %275 }
 0x3a9   : > { %279 = vst.msk [vmem:[%s278_s23] sm:$0xff] %vm31_vm1, %v276_v62 }
 0x3ab   :  { %132 = sbr.rel (!%p130_p0) target bundleno = 226 (0xe2), region = 55 }
 0x3ac   : > { %v287_v63 = vpop.permute.xlu0 %286  ;;  %v282_v0 = vpop.permute.xlu1 %281 }
 0x3ad   : > { %v289_v23 = vsel %vm31_vm1, %v276_v62, %v287_v63   ;;  %285 = vst.msk [vmem:[%s284_s1] sm:$0xff] %vm31_vm1, %v282_v0 }
 0x3b0   : > { %v296_v1 = vpop.permute.xlu0 %295  ;;  %v292_v2 = vpop.permute.xlu1 %291 }
 0x3b1   : > { %v298_v22 = vsel %vm31_vm1, %v292_v2, %v296_v1  }

// kernel: encoder_forward.7
= control target key start
LH: loop header
LB: loop body
LE: loop exit
PB: predicated region body
PF: predicated region fallthrough
CT: control target
= control target key end

     0   :  { %vm15_vm0 = vcmask 261120   ;;  %v195_v0 = vmov 0.0   ;;  %vm196_vm1 = vmmov 0   ;;  %vm168_vm2 = vcmask 31744   ;;  %s230_s1 = inlined_call_operand.vmem [shape: f32[2,4,32], index: 1, kind: input, shape index: {}]   ;;  %s231_s0 = inlined_call_operand.vmem [shape: f32[2,8,32], index: 0, kind: input, shape index: {}]   ;;  %s232_s2 = inlined_call_operand.vmem [shape: f32[2,8,4], index: 2, kind: output, shape index: {}]  }
   0x1   :  { %183 = vmatprep.subr.mxu0 %v195_v0  ;;  %188 = vmatprep.subr.mxu1 %v195_v0  ;;  %v13_v1 = vld [vmem:[%s230_s1] sm:$0xf]  ;;  %v14_v2 = vld [vmem:[%s230_s1 + $0x4] sm:$0xf]  ;;  %v12_v4 = vld [vmem:[%s231_s0 + $0x8] sm:$0xff] }
   0x2   :  { %184 = vmatpush3.xpose.msk.msra.mxu0 %vm15_vm0, %v13_v1  ;;  %189 = vmatpush3.xpose.msk.msra.mxu1 %vm15_vm0, %v14_v2  ;;  %v11_v3 = vld [vmem:[%s231_s0] sm:$0xff] }
   0x3   :  { %185 = vmatprep.mubr.msk.f32.mxu0 %vm196_vm1, %v195_v0  ;;  %190 = vmatprep.mubr.msk.f32.mxu1 %vm196_vm1, %v195_v0 }
   0x5   :  { %186 = vmatmul.mubr.msk.f32.vlgmr.msra.gmra.mrb[0].mxu0 %vm15_vm0, %v11_v3  ;;  %191 = vmatmul.mubr.msk.f32.vlgmr.msra.gmra.mrb[0].mxu1 %vm15_vm0, %v12_v4 }
  0xd8   :  { %v88_v5 = vpop.f32.mrb[0].mxu0  ;;  %v164_v6 = vpop.f32.mrb[0].mxu1 }
  0xd9   :  { %169 = vst.msk [vmem:[%s232_s2] sm:$0xff] %vm168_vm2, %v88_v5  ;;  %170 = vst.msk [vmem:[%s232_s2 + $0x8] sm:$0xff] %vm168_vm2, %v164_v6  ;;  %v187_v7 = vpop.f32.mrb[1].mxu0  ;;  %v192_v8 = vpop.f32.mrb[1].mxu1 }

// kernel: encoder_forward.5
= control target key start
LH: loop header
LB: loop body
LE: loop exit
PB: predicated region body
PF: predicated region fallthrough
CT: control target
= control target key end

     0   :  { %vm30_vm0 = vcmask 130048   ;;  %v511_v14 = vmov 0.0   ;;  %v513_v15 = vmov 0.0   ;;  %s515_s9 = smov 0   ;;  %s557_s1 = inlined_call_operand.vmem [shape: f32[16,128], index: 1, kind: input, shape index: {}]   ;;  %s558_s4 = inlined_call_operand.vmem [shape: f32[8,2,16], index: 4, kind: output, shape index: {0}]   ;;  %s559_s5 = inlined_call_operand.vmem [shape: f32[8,2,16], index: 5, kind: output, shape index: {1}]   ;;  %s560_s0 = inlined_call_operand.vmem [shape: f32[16,16], index: 0, kind: input, shape index: {}]   ;;  %s561_s2 = inlined_call_operand.vmem [shape: f32[32,128], index: 2, kind: input, shape index: {}]   ;;  %s562_s3 = inlined_call_operand.vmem [shape: f32[1,128], index: 3, kind: input, shape index: {}]  }
   0x1   :  { %v21_v0 = vld [vmem:[%s557_s1] sm:$0xff]  ;;  %v22_v1 = vld [vmem:[%s557_s1 + $0x8] sm:$0xff]  ;;  %v501_v7 = vld [vmem:[%s561_s2 + $0x10] sm:$0xff] }
   0x2   :  { %v19_v2 = vld [vmem:[%s560_s0] sm:$0xff]  ;;  %v352_v3 = vpack.c.bf16 %v22_v1, %v21_v0  ;;  %v20_v4 = vld [vmem:[%s560_s0 + $0x8] sm:$0xff]  ;;  %v506_v8 = vld [vmem:[%s561_s2 + $0x18] sm:$0xff] }
   0x3   :  { %338 = vmatprep.mubr.msk.f32.mxu0 %vm30_vm0, %v19_v2  ;;  %v491_v5 = vld [vmem:[%s561_s2] sm:$0xff]  ;;  %v496_v6 = vld [vmem:[%s561_s2 + $0x8] sm:$0xff] }
   0x4   :  { %353 = vmatprep.subr.bf16.mxu0 %v352_v3  ;;  %v317_v9 = vld [vmem:[%s562_s3] ss:$0 sm:$0xff] }
   0x5   :  { %355 = vmatpush3.bf16.msra.mxu0 %v352_v3 }
   0x8   :  { %339 = vmatmul.mubr.msk.f32.vlgmr.msra.gmra.mrb[0].mxu0 %vm30_vm0, %v20_v4 }
  0xdb   :  { %v340_v10 = vpop.f32.mrb[0].mxu0 }
  0xdc   :  { %v109_v11 = vadd.f32 %v340_v10, %v317_v9  ;;  %v103_v12 = vpop.f32.mrb[1].mxu0 }
  0xdd   :  { %v104_v13 = vadd.f32 %v317_v9, %v103_v12 }
  0xde   :  { %113 = vst [vmem:[#allocation2 + $0x8] sm:$0xff] %v109_v11 }
  0xdf   :  { %112 = vst [vmem:[#allocation2] sm:$0xff] %v104_v13 }
  0xe0 LB: > { %v357_v16 = vpack.c.bf16 %v496_v6, %v491_v5  ;;  %v435_v17 = vmov 0.0|0.0   ;;  %v360_v18 = vpack.c.bf16 %v506_v8, %v501_v7  ;;  %vm436_vm1 = vmmov 0   ;;  %s438_s2 = smov 16   ;;  %s439_s3 = smov 64   ;;  %s433_s9 = sphi %s515_s9, %s123_s9   ;;  %v429_v15 = vphi %v513_v15, %v280_v15   ;;  %v425_v14 = vphi %v511_v14, %v289_v14  }
  0xe1   : > { %356 = vmatprep.subr.bf16.mxu0 %v435_v17  ;;  %v437_v19 = vmov 0.0   ;;  %224 = vrot.lane.b32.xlu1 %v425_v14, %s438_s2  ;;  %vm126_vm2 = vcmask 261120   ;;  %s203_s10 = ssub.s32 7, %s433_s9  ;;  %s321_s11 = sshll.u32 %s433_s9, 1  ;;  %vm269_vm3 = vcmask 123904  }
  0xe2   : > { %358 = vmatpush3.bf16.msra.mxu0 %v357_v16  ;;  %349 = vmatprep.mubr.msk.f32.mxu0 %vm436_vm1, %v437_v19  ;;  %s530_s12 = sshll.u32 %s203_s10, 1  ;;  %s201_s13 = scalar_lea.vmem [#allocation2], %s321_s11 }
  0xe3   : > { %359 = vmatprep.subr.bf16.mxu0 %v435_v17  ;;  %s205_s14 = scalar_lea.vmem [#allocation2], %s530_s12  ;;  %s440_s15 = smov 96  }
  0xe4   : > { %s441_s16 = smov 32   ;;  %s442_s17 = smov 80  }
  0xe5   : > { %238 = vrot.lane.b32.xlu1 %v425_v14, %s439_s3  ;;  %s443_s18 = smov 112   ;;  %s268_s21 = scalar_lea.vmem %s558_s4, %s321_s11 }
  0xe6   : > { %361 = vmatpush3.bf16.msra.mxu0 %v360_v18  ;;  %v202_v20 = vld [vmem:[%s201_s13] sm:$0x3]  ;;  %s275_s24 = scalar_lea.vmem %s559_s5, %s530_s12  ;;  %s123_s9 = sadd.s32 1, %s433_s9  }
  0xe7   : > { %v206_v22 = vld [vmem:[%s205_s14] sm:$0x3]  ;;  %p120_p0 = scmp.ge.s32.totalorder %s123_s9, 8  }
  0xe9   : > { %350 = vmatmul.mubr.msk.f32.vlgmr.msra.gmra.mrb[0].mxu0 %vm126_vm2, %v429_v15 }
 0x153   : > { %v225_v40 = vpop.permute.xlu1 %224 }
 0x157   : > { %v239_v42 = vpop.permute.xlu1 %238 }
 0x1bc   : > { %v196_v21 = vpop.f32.mrb[0].mxu0 }
 0x1bd   : > { %v207_v23 = vadd.f32 %v202_v20, %v196_v21  ;;  %v351_v24 = vpop.f32.mrb[1].mxu0  ;;  %v208_v25 = vadd.f32 %v206_v22, %v196_v21 }
 0x1bf   : > { %395 = vtanh.f32 %v207_v23  ;;  %v323_v28 = vmul.f32 -1.442695, %v207_v23  ;;  %v324_v29 = vmul.f32 -1.442695, %v208_v25 }
 0x1c0   : > { %397 = vtanh.f32 %v208_v25 }
 0x1c1   : > { %399 = vpow2.f32 %v323_v28 }
 0x1c2   : > { %401 = vpow2.f32 %v324_v29 }
 0x1c9   : > { %v396_v26 = vpop.eup %395 }
 0x1ca   : > { %229 = vrot.lane.b32.xlu0 %v396_v26, %s440_s15  ;;  %v398_v27 = vpop.eup %397 }
 0x1cb   : > { %v400_v30 = vpop.eup %399 }
 0x1cc   : > { %v212_v31 = vadd.f32 1.0, %v400_v30  ;;  %v402_v32 = vpop.eup %401 }
 0x1cd   : > { %v219_v33 = vadd.f32 1.0, %v402_v32 }
 0x1ce   : > { %243 = vrot.lane.b32.xlu0 %v398_v27, %s440_s15  ;;  %403 = vrcp.f32 %v212_v31 }
 0x1cf   : > { %405 = vrcp.f32 %v219_v33 }
 0x1d8   : > { %v404_v34 = vpop.eup %403 }
 0x1d9   : > { %v406_v37 = vpop.eup %405  ;;  %v227_v41 = vmul.f32 %v404_v34, %v225_v40 }
 0x1da   : > { %v241_v45 = vmul.f32 %v406_v37, %v239_v42 }
 0x23c   : > { %v230_v35 = vpop.permute.xlu0 %229 }
 0x23d   : > { %v232_v36 = vmul.f32 %v404_v34, %v230_v35 }
 0x23f   : > { %234 = vrot.lane.b32.xlu0 %v232_v36, %s438_s2 }
 0x240   : > { %v244_v38 = vpop.permute.xlu0 %243 }
 0x241   : > { %v246_v39 = vmul.f32 %v406_v37, %v244_v38 }
 0x243   : > { %248 = vrot.lane.b32.xlu1 %v246_v39, %s438_s2 }
 0x2b1   : > { %v235_v43 = vpop.permute.xlu0 %234 }
 0x2b2   : > { %v237_v44 = vadd.f32 %v235_v43, %v227_v41 }
 0x2b4   : > { %407 = vtanh.f32 %v237_v44 }
 0x2b5   : > { %v249_v46 = vpop.permute.xlu1 %248 }
 0x2b6   : > { %v251_v47 = vadd.f32 %v249_v46, %v241_v45 }
 0x2b8   : > { %409 = vtanh.f32 %v251_v47 }
 0x2be   : > { %v408_v48 = vpop.eup %407 }
 0x2bf   : > { %254 = vrot.lane.b32.xlu0 %v408_v48, %s441_s16 }
 0x2c2   : > { %v410_v49 = vpop.eup %409 }
 0x2c3   : > { %260 = vrot.lane.b32.xlu1 %v410_v49, %s441_s16 }
 0x331   : > { %v255_v50 = vpop.permute.xlu0 %254 }
 0x332   : > { %v257_v51 = vmul.f32 %v404_v34, %v255_v50 }
 0x334   : > { %265 = vrot.lane.b32.xlu0 %v257_v51, %s442_s17 }
 0x335   : > { %v261_v52 = vpop.permute.xlu1 %260 }
 0x336   : > { %v263_v53 = vmul.f32 %v406_v37, %v261_v52 }
 0x338   : > { %277 = vrot.lane.b32.xlu0 %v263_v53, %s441_s16  ;;  %272 = vrot.lane.b32.xlu1 %v263_v53, %s438_s2 }
 0x33c   : > { %286 = vrot.lane.b32.xlu0 %v251_v47, %s439_s3  ;;  %282 = vrot.lane.b32.xlu1 %v237_v44, %s443_s18 }
 0x3a6   : > { %v266_v54 = vpop.permute.xlu0 %265 }
 0x3a7   : > { %270 = vst.msk [vmem:[%s268_s21] sm:$0x3] %vm269_vm3, %v266_v54 }
 0x3a9   :  { %122 = sbr.rel (!%p120_p0) target bundleno = 224 (0xe0), region = 55 }
 0x3aa   : > { %v278_v55 = vpop.permute.xlu0 %277  ;;  %v273_v56 = vpop.permute.xlu1 %272 }
 0x3ab   : > { %v280_v15 = vsel %vm30_vm0, %v266_v54, %v278_v55   ;;  %276 = vst.msk [vmem:[%s275_s24] sm:$0x3] %vm269_vm3, %v273_v56 }
 0x3ae   : > { %v287_v57 = vpop.permute.xlu0 %286  ;;  %v283_v58 = vpop.permute.xlu1 %282 }
 0x3af   : > { %v289_v14 = vsel %vm30_vm0, %v283_v58, %v287_v57  }

// kernel: encoder_forward.9
= control target key start
LH: loop header
LB: loop body
LE: loop exit
PB: predicated region body
PF: predicated region fallthrough
CT: control target
= control target key end

     0   :  { %v441_v0 = vmov 0.0|0.0   ;;  %vm442_vm0 = vmmov 0   ;;  %v443_v4 = vmov 0.0   ;;  %vm32_vm1 = vcmask 326656   ;;  %s528_s13 = smov 0   ;;  %s568_s4 = inlined_call_operand.vmem [shape: f32[4,2,16], index: 4, kind: output, shape index: {0}]   ;;  %s569_s5 = inlined_call_operand.vmem [shape: f32[4,2,16], index: 5, kind: output, shape index: {1}]   ;;  %s570_s1 = inlined_call_operand.vmem [shape: f32[40,128], index: 1, kind: input, shape index: {}]   ;;  %s571_s0 = inlined_call_operand.vmem [shape: f32[8,40], index: 0, kind: input, shape index: {}]   ;;  %s572_s2 = inlined_call_operand.vmem [shape: f32[32,128], index: 2, kind: input, shape index: {}]   ;;  %s573_s3 = inlined_call_operand.vmem [shape: f32[1,128], index: 3, kind: input, shape index: {}]  }
   0x1   :  { %353 = vmatprep.subr.bf16.mxu0 %v441_v0  ;;  %v20_v1 = vld [vmem:[%s570_s1] sm:$0xff]  ;;  %v21_v2 = vld [vmem:[%s570_s1 + $0x8] sm:$0xff]  ;;  %v22_v3 = vld [vmem:[%s570_s1 + $0x10] sm:$0xff]  ;;  %339 = vmatprep.mubr.msk.f32.mxu0 %vm442_vm0, %v443_v4  ;;  %v524_v18 = vmov 0.0   ;;  %v526_v19 = vmov 0.0  }
   0x2   :  { %v354_v5 = vpack.c.bf16 %v21_v2, %v20_v1  ;;  %v23_v6 = vld [vmem:[%s570_s1 + $0x18] sm:$0xff]  ;;  %v24_v8 = vld [vmem:[%s570_s1 + $0x20] sm:$0xff]  ;;  %v509_v11 = vld [vmem:[%s572_s2 + $0x8] sm:$0xff] }
   0x3   :  { %v357_v7 = vpack.c.bf16 %v23_v6, %v22_v3  ;;  %v19_v9 = vld [vmem:[%s571_s0] sm:$0xff]  ;;  %v514_v12 = vld [vmem:[%s572_s2 + $0x10] sm:$0xff]  ;;  %v519_v13 = vld [vmem:[%s572_s2 + $0x18] sm:$0xff] }
   0x4   :  { %355 = vmatpush3.bf16.msra.mxu0 %v354_v5  ;;  %v504_v10 = vld [vmem:[%s572_s2] sm:$0xff] }
   0x5   :  { %356 = vmatprep.subr.bf16.mxu0 %v441_v0  ;;  %v311_v14 = vld [vmem:[%s573_s3] ss:$0 sm:$0xff] }
   0x8   :  { %358 = vmatpush3.bf16.msra.mxu0 %v357_v7 }
   0x9   :  { %337 = vmatprep.subr.mxu0 %v443_v4 }
   0xc   :  { %338 = vmatpush3.msra.mxu0 %v24_v8 }
   0xd   :  { %340 = vmatmul.mubr.msk.f32.vlgmr.msra.gmra.mrb[0].mxu0 %vm32_vm1, %v19_v9 }
  0xe0   :  { %v102_v15 = vpop.f32.mrb[0].mxu0 }
  0xe1   :  { %v103_v16 = vadd.f32 %v311_v14, %v102_v15  ;;  %v341_v17 = vpop.f32.mrb[1].mxu0 }
  0xe3   :  { %106 = vst [vmem:[#allocation2] sm:$0xff] %v103_v16 }
  0xe4 LB: > { %v360_v20 = vpack.c.bf16 %v509_v11, %v504_v10  ;;  %v444_v21 = vmov 0.0|0.0   ;;  %v363_v22 = vpack.c.bf16 %v519_v13, %v514_v12  ;;  %vm445_vm2 = vmmov 0   ;;  %s447_s2 = smov 16   ;;  %s448_s3 = smov 64   ;;  %s439_s13 = sphi %s528_s13, %s116_s13   ;;  %v435_v19 = vphi %v526_v19, %v274_v19   ;;  %v431_v18 = vphi %v524_v18, %v283_v18  }
  0xe5   : > { %359 = vmatprep.subr.bf16.mxu0 %v444_v21  ;;  %v446_v23 = vmov 0.0   ;;  %217 = vrot.lane.b32.xlu1 %v431_v18, %s447_s2  ;;  %vm119_vm3 = vcmask 261120   ;;  %s196_s14 = ssub.s32 3, %s439_s13  ;;  %s314_s15 = sshll.u32 %s439_s13, 1  ;;  %vm262_vm4 = vcmask 123904   ;;  %vm273_vm5 = vcmask 130048  }
  0xe6   : > { %361 = vmatpush3.bf16.msra.mxu0 %v360_v20  ;;  %350 = vmatprep.mubr.msk.f32.mxu0 %vm445_vm2, %v446_v23  ;;  %s543_s16 = sshll.u32 %s196_s14, 1  ;;  %s194_s17 = scalar_lea.vmem [#allocation2], %s314_s15 }
  0xe7   : > { %362 = vmatprep.subr.bf16.mxu0 %v444_v21  ;;  %s198_s18 = scalar_lea.vmem [#allocation2], %s543_s16  ;;  %s449_s19 = smov 96  }
  0xe8   : > { %s450_s20 = smov 32   ;;  %s451_s21 = smov 80  }
  0xe9   : > { %231 = vrot.lane.b32.xlu1 %v431_v18, %s448_s3  ;;  %s452_s22 = smov 112   ;;  %s261_s25 = scalar_lea.vmem %s568_s4, %s314_s15 }
  0xea   : > { %364 = vmatpush3.bf16.msra.mxu0 %v363_v22  ;;  %v195_v24 = vld [vmem:[%s194_s17] sm:$0x3]  ;;  %s268_s28 = scalar_lea.vmem %s569_s5, %s543_s16  ;;  %s116_s13 = sadd.s32 1, %s439_s13  }
  0xeb   : > { %v199_v26 = vld [vmem:[%s198_s18] sm:$0x3]  ;;  %p113_p0 = scmp.ge.s32.totalorder %s116_s13, 4  }
  0xed   : > { %351 = vmatmul.mubr.msk.f32.vlgmr.msra.gmra.mrb[0].mxu0 %vm119_vm3, %v435_v19 }
 0x157   : > { %v218_v44 = vpop.permute.xlu1 %217 }
 0x15b   : > { %v232_v46 = vpop.permute.xlu1 %231 }
 0x1c0   : > { %v189_v25 = vpop.f32.mrb[0].mxu0 }
 0x1c1   : > { %v200_v27 = vadd.f32 %v195_v24, %v189_v25  ;;  %v352_v28 = vpop.f32.mrb[1].mxu0  ;;  %v201_v29 = vadd.f32 %v199_v26, %v189_v25 }
 0x1c3   : > { %401 = vtanh.f32 %v200_v27  ;;  %v316_v32 = vmul.f32 -1.442695, %v200_v27  ;;  %v317_v33 = vmul.f32 -1.442695, %v201_v29 }
 0x1c4   : > { %403 = vtanh.f32 %v201_v29 }
 0x1c5   : > { %405 = vpow2.f32 %v316_v32 }
 0x1c6   : > { %407 = vpow2.f32 %v317_v33 }
 0x1cd   : > { %v402_v30 = vpop.eup %401 }
 0x1ce   : > { %222 = vrot.lane.b32.xlu0 %v402_v30, %s449_s19  ;;  %v404_v31 = vpop.eup %403 }
 0x1cf   : > { %v406_v34 = vpop.eup %405 }
 0x1d0   : > { %v205_v35 = vadd.f32 1.0, %v406_v34  ;;  %v408_v36 = vpop.eup %407 }
 0x1d1   : > { %v212_v37 = vadd.f32 1.0, %v408_v36 }
 0x1d2   : > { %236 = vrot.lane.b32.xlu0 %v404_v31, %s449_s19  ;;  %409 = vrcp.f32 %v205_v35 }
 0x1d3   : > { %411 = vrcp.f32 %v212_v37 }
 0x1dc   : > { %v410_v38 = vpop.eup %409 }
 0x1dd   : > { %v412_v41 = vpop.eup %411  ;;  %v220_v45 = vmul.f32 %v410_v38, %v218_v44 }
 0x1de   : > { %v234_v49 = vmul.f32 %v412_v41, %v232_v46 }
 0x240   : > { %v223_v39 = vpop.permute.xlu0 %222 }
 0x241   : > { %v225_v40 = vmul.f32 %v410_v38, %v223_v39 }
 0x243   : > { %227 = vrot.lane.b32.xlu0 %v225_v40, %s447_s2 }
 0x244   : > { %v237_v42 = vpop.permute.xlu0 %236 }
 0x245   : > { %v239_v43 = vmul.f32 %v412_v41, %v237_v42 }
 0x247   : > { %241 = vrot.lane.b32.xlu1 %v239_v43, %s447_s2 }
 0x2b5   : > { %v228_v47 = vpop.permute.xlu0 %227 }
 0x2b6   : > { %v230_v48 = vadd.f32 %v228_v47, %v220_v45 }
 0x2b8   : > { %413 = vtanh.f32 %v230_v48 }
 0x2b9   : > { %v242_v50 = vpop.permute.xlu1 %241 }
 0x2ba   : > { %v244_v51 = vadd.f32 %v242_v50, %v234_v49 }
 0x2bc   : > { %415 = vtanh.f32 %v244_v51 }
 0x2c2   : > { %v414_v52 = vpop.eup %413 }
 0x2c3   : > { %247 = vrot.lane.b32.xlu0 %v414_v52, %s450_s20 }
 0x2c6   : > { %v416_v53 = vpop.eup %415 }
 0x2c7   : > { %253 = vrot.lane.b32.xlu1 %v416_v53, %s450_s20 }
 0x335   : > { %v248_v54 = vpop.permute.xlu0 %247 }
 0x336   : > { %v250_v55 = vmul.f32 %v410_v38, %v248_v54 }
 0x338   : > { %258 = vrot.lane.b32.xlu0 %v250_v55, %s451_s21 }
 0x339   : > { %v254_v56 = vpop.permute.xlu1 %253 }
 0x33a   : > { %v256_v57 = vmul.f32 %v412_v41, %v254_v56 }
 0x33c   : > { %270 = vrot.lane.b32.xlu0 %v256_v57, %s450_s20  ;;  %265 = vrot.lane.b32.xlu1 %v256_v57, %s447_s2 }
 0x340   : > { %280 = vrot.lane.b32.xlu0 %v244_v51, %s448_s3  ;;  %276 = vrot.lane.b32.xlu1 %v230_v48, %s452_s22 }
 0x3aa   : > { %v259_v58 = vpop.permute.xlu0 %258 }
 0x3ab   : > { %263 = vst.msk [vmem:[%s261_s25] sm:$0x3] %vm262_vm4, %v259_v58 }
 0x3ad   :  { %115 = sbr.rel (!%p113_p0) target bundleno = 228 (0xe4), region = 55 }
 0x3ae   : > { %v271_v59 = vpop.permute.xlu0 %270  ;;  %v266_v60 = vpop.permute.xlu1 %265 }
 0x3af   : > { %v274_v19 = vsel %vm273_vm5, %v259_v58, %v271_v59   ;;  %269 = vst.msk [vmem:[%s268_s28] sm:$0x3] %vm262_vm4, %v266_v60 }
 0x3b2   : > { %v281_v61 = vpop.permute.xlu0 %280  ;;  %v277_v62 = vpop.permute.xlu1 %276 }
 0x3b3   : > { %v283_v18 = vsel %vm273_vm5, %v277_v62, %v281_v61  }

// kernel: encoder_forward.8
= control target key start
LH: loop header
LB: loop body
LE: loop exit
PB: predicated region body
PF: predicated region fallthrough
CT: control target
= control target key end

     0   :  { %vm33_vm0 = vcmask 293888   ;;  %vm40_vm1 = vcmask 1043456   ;;  %v542_v18 = vmov 0.0   ;;  %v544_v19 = vmov 0.0   ;;  %s546_s15 = smov 0   ;;  %s586_s1 = inlined_call_operand.vmem [shape: f32[36,128], index: 1, kind: input, shape index: {}]   ;;  %s587_s4 = inlined_call_operand.vmem [shape: f32[8,2,16], index: 4, kind: output, shape index: {0}]   ;;  %s588_s5 = inlined_call_operand.vmem [shape: f32[8,2,16], index: 5, kind: output, shape index: {1}]   ;;  %s589_s0 = inlined_call_operand.vmem [shape: f32[16,36], index: 0, kind: input, shape index: {}]   ;;  %s590_s2 = inlined_call_operand.vmem [shape: f32[32,128], index: 2, kind: input, shape index: {}]   ;;  %s591_s3 = inlined_call_operand.vmem [shape: f32[1,128], index: 3, kind: input, shape index: {}]  }
   0x1   :  { %v21_v0 = vld [vmem:[%s586_s1] sm:$0xff]  ;;  %v22_v1 = vld [vmem:[%s586_s1 + $0x8] sm:$0xff]  ;;  %v23_v2 = vld [vmem:[%s586_s1 + $0x10] sm:$0xff] }
   0x2   :  { %v370_v3 = vpack.c.bf16 %v22_v1, %v21_v0  ;;  %v24_v4 = vld [vmem:[%s586_s1 + $0x18] sm:$0xff]  ;;  %v19_v5 = vld [vmem:[%s589_s0] sm:$0xff]  ;;  %v20_v8 = vld [vmem:[%s589_s0 + $0x8] sm:$0xff] }
   0x3   :  { %v374_v6 = vpack.c.bf16 %v24_v4, %v23_v2  ;;  %356 = vmatprep.mubr.msk.f32.mxu0 %vm33_vm0, %v19_v5  ;;  %v25_v7 = vld [vmem:[%s586_s1 + $0x20] sm:$0xf]  ;;  %v527_v10 = vld [vmem:[%s590_s2 + $0x8] sm:$0xff]  ;;  %v532_v11 = vld [vmem:[%s590_s2 + $0x10] sm:$0xff] }
   0x4   :  { %371 = vmatprep.subr.bf16.mxu0 %v370_v3  ;;  %v522_v9 = vld [vmem:[%s590_s2] sm:$0xff]  ;;  %v537_v12 = vld [vmem:[%s590_s2 + $0x18] sm:$0xff] }
   0x5   :  { %373 = vmatpush3.bf16.msra.mxu0 %v370_v3  ;;  %v325_v13 = vld [vmem:[%s591_s3] ss:$0 sm:$0xff] }
   0x6   :  { %375 = vmatprep.subr.bf16.mxu0 %v374_v6 }
   0x9   :  { %377 = vmatpush3.bf16.msra.mxu0 %v374_v6 }
   0xa   :  { %354 = vmatprep.subr.msk.mxu0 %vm40_vm1, %v25_v7 }
   0xd   :  { %355 = vmatpush3.msk.msra.mxu0 %vm40_vm1, %v25_v7 }
   0xe   :  { %357 = vmatmul.mubr.msk.f32.vlgmr.msra.gmra.mrb[0].mxu0 %vm33_vm0, %v20_v8 }
  0xe1   :  { %v358_v14 = vpop.f32.mrb[0].mxu0 }
  0xe2   :  { %v116_v15 = vadd.f32 %v358_v14, %v325_v13  ;;  %v110_v16 = vpop.f32.mrb[1].mxu0 }
  0xe3   :  { %v111_v17 = vadd.f32 %v325_v13, %v110_v16 }
  0xe4   :  { %120 = vst [vmem:[#allocation2 + $0x8] sm:$0xff] %v116_v15 }
  0xe5   :  { %119 = vst [vmem:[#allocation2] sm:$0xff] %v111_v17 }
  0xe6 LB: > { %v379_v20 = vpack.c.bf16 %v527_v10, %v522_v9  ;;  %v457_v21 = vmov 0.0|0.0   ;;  %v382_v22 = vpack.c.bf16 %v537_v12, %v532_v11  ;;  %vm458_vm2 = vmmov 0   ;;  %s460_s2 = smov 16   ;;  %s461_s3 = smov 64   ;;  %s455_s15 = sphi %s546_s15, %s130_s15   ;;  %v451_v19 = vphi %v544_v19, %v288_v19   ;;  %v447_v18 = vphi %v542_v18, %v297_v18  }
  0xe7   : > { %378 = vmatprep.subr.bf16.mxu0 %v457_v21  ;;  %v459_v23 = vmov 0.0   ;;  %231 = vrot.lane.b32.xlu1 %v447_v18, %s460_s2  ;;  %vm133_vm3 = vcmask 261120   ;;  %s210_s16 = ssub.s32 7, %s455_s15  ;;  %s330_s17 = sshll.u32 %s455_s15, 1  ;;  %vm276_vm4 = vcmask 123904   ;;  %vm287_vm5 = vcmask 130048  }
  0xe8   : > { %380 = vmatpush3.bf16.msra.mxu0 %v379_v20  ;;  %367 = vmatprep.mubr.msk.f32.mxu0 %vm458_vm2, %v459_v23  ;;  %s561_s18 = sshll.u32 %s210_s16, 1  ;;  %s208_s19 = scalar_lea.vmem [#allocation2], %s330_s17 }
  0xe9   : > { %381 = vmatprep.subr.bf16.mxu0 %v457_v21  ;;  %s212_s20 = scalar_lea.vmem [#allocation2], %s561_s18  ;;  %s462_s21 = smov 96  }
  0xea   : > { %s463_s22 = smov 32   ;;  %s464_s23 = smov 80  }
  0xeb   : > { %245 = vrot.lane.b32.xlu1 %v447_v18, %s461_s3  ;;  %s465_s24 = smov 112   ;;  %s275_s27 = scalar_lea.vmem %s587_s4, %s330_s17 }
  0xec   : > { %383 = vmatpush3.bf16.msra.mxu0 %v382_v22  ;;  %v209_v24 = vld [vmem:[%s208_s19] sm:$0x3]  ;;  %s282_s30 = scalar_lea.vmem %s588_s5, %s561_s18  ;;  %s130_s15 = sadd.s32 1, %s455_s15  }
  0xed   : > { %v213_v26 = vld [vmem:[%s212_s20] sm:$0x3]  ;;  %p127_p0 = scmp.ge.s32.totalorder %s130_s15, 8  }
  0xef   : > { %368 = vmatmul.mubr.msk.f32.vlgmr.msra.gmra.mrb[0].mxu0 %vm133_vm3, %v451_v19 }
 0x159   : > { %v232_v44 = vpop.permute.xlu1 %231 }
 0x15d   : > { %v246_v46 = vpop.permute.xlu1 %245 }
 0x1c2   : > { %v203_v25 = vpop.f32.mrb[0].mxu0 }
 0x1c3   : > { %v214_v27 = vadd.f32 %v209_v24, %v203_v25  ;;  %v369_v28 = vpop.f32.mrb[1].mxu0  ;;  %v215_v29 = vadd.f32 %v213_v26, %v203_v25 }
 0x1c5   : > { %417 = vtanh.f32 %v214_v27  ;;  %v332_v32 = vmul.f32 -1.442695, %v214_v27  ;;  %v333_v33 = vmul.f32 -1.442695, %v215_v29 }
 0x1c6   : > { %419 = vtanh.f32 %v215_v29 }
 0x1c7   : > { %421 = vpow2.f32 %v332_v32 }
 0x1c8   : > { %423 = vpow2.f32 %v333_v33 }
 0x1cf   : > { %v418_v30 = vpop.eup %417 }
 0x1d0   : > { %236 = vrot.lane.b32.xlu0 %v418_v30, %s462_s21  ;;  %v420_v31 = vpop.eup %419 }
 0x1d1   : > { %v422_v34 = vpop.eup %421 }
 0x1d2   : > { %v219_v35 = vadd.f32 1.0, %v422_v34  ;;  %v424_v36 = vpop.eup %423 }
 0x1d3   : > { %v226_v37 = vadd.f32 1.0, %v424_v36 }
 0x1d4   : > { %250 = vrot.lane.b32.xlu0 %v420_v31, %s462_s21  ;;  %425 = vrcp.f32 %v219_v35 }
 0x1d5   : > { %427 = vrcp.f32 %v226_v37 }
 0x1de   : > { %v426_v38 = vpop.eup %425 }
 0x1df   : > { %v428_v41 = vpop.eup %427  ;;  %v234_v45 = vmul.f32 %v426_v38, %v232_v44 }
 0x1e0   : > { %v248_v49 = vmul.f32 %v428_v41, %v246_v46 }
 0x242   : > { %v237_v39 = vpop.permute.xlu0 %236 }
 0x243   : > { %v239_v40 = vmul.f32 %v426_v38, %v237_v39 }
 0x245   : > { %241 = vrot.lane.b32.xlu0 %v239_v40, %s460_s2 }
 0x246   : > { %v251_v42 = vpop.permute.xlu0 %250 }
 0x247   : > { %v253_v43 = vmul.f32 %v428_v41, %v251_v42 }
 0x249   : > { %255 = vrot.lane.b32.xlu1 %v253_v43, %s460_s2 }
 0x2b7   : > { %v242_v47 = vpop.permute.xlu0 %241 }
 0x2b8   : > { %v244_v48 = vadd.f32 %v242_v47, %v234_v45 }
 0x2ba   : > { %429 = vtanh.f32 %v244_v48 }
 0x2bb   : > { %v256_v50 = vpop.permute.xlu1 %255 }
 0x2bc   : > { %v258_v51 = vadd.f32 %v256_v50, %v248_v49 }
 0x2be   : > { %431 = vtanh.f32 %v258_v51 }
 0x2c4   : > { %v430_v52 = vpop.eup %429 }
 0x2c5   : > { %261 = vrot.lane.b32.xlu0 %v430_v52, %s463_s22 }
 0x2c8   : > { %v432_v53 = vpop.eup %431 }
 0x2c9   : > { %267 = vrot.lane.b32.xlu1 %v432_v53, %s463_s22 }
 0x337   : > { %v262_v54 = vpop.permute.xlu0 %261 }
 0x338   : > { %v264_v55 = vmul.f32 %v426_v38, %v262_v54 }
 0x33a   : > { %272 = vrot.lane.b32.xlu0 %v264_v55, %s464_s23 }
 0x33b   : > { %v268_v56 = vpop.permute.xlu1 %267 }
 0x33c   : > { %v270_v57 = vmul.f32 %v428_v41, %v268_v56 }
 0x33e   : > { %284 = vrot.lane.b32.xlu0 %v270_v57, %s463_s22  ;;  %279 = vrot.lane.b32.xlu1 %v270_v57, %s460_s2 }
 0x342   : > { %294 = vrot.lane.b32.xlu0 %v258_v51, %s461_s3  ;;  %290 = vrot.lane.b32.xlu1 %v244_v48, %s465_s24 }
 0x3ac   : > { %v273_v58 = vpop.permute.xlu0 %272 }
 0x3ad   : > { %277 = vst.msk [vmem:[%s275_s27] sm:$0x3] %vm276_vm4, %v273_v58 }
 0x3af   :  { %129 = sbr.rel (!%p127_p0) target bundleno = 230 (0xe6), region = 55 }
 0x3b0   : > { %v285_v59 = vpop.permute.xlu0 %284  ;;  %v280_v60 = vpop.permute.xlu1 %279 }
 0x3b1   : > { %v288_v19 = vsel %vm287_vm5, %v273_v58, %v285_v59   ;;  %283 = vst.msk [vmem:[%s282_s30] sm:$0x3] %vm276_vm4, %v280_v60 }
 0x3b4   : > { %v295_v61 = vpop.permute.xlu0 %294  ;;  %v291_v62 = vpop.permute.xlu1 %290 }
 0x3b5   : > { %v297_v18 = vsel %vm287_vm5, %v291_v62, %v295_v61  }

</bundles_post_ra>
